<compile_context>
chip_gen: v5e
topology: v5e:2x2
jax: 0.10.0
libtpu: 0.0.40
codegen_flags: <defaults>
</compile_context>

<pallas_src>
import functools

import jax
import jax.numpy as jnp
from jax.experimental import pallas as pl
from jax.experimental.pallas import tpu as pltpu

EPS = 1e-5


# ----------------------------------------------------------------------------
# Pallas kernels
# ----------------------------------------------------------------------------
def _conv_stats_kernel(g_ref, x_ref, wg_ref, wx_ref, stats_ref):
    """Pass 1: z_g = Wg@g, z_x = Wx@x; accumulate per-channel sum / sum-sq.

    stats_ref is this batch element's resident (Fint, 4) block, accumulated
    across the tile axis.  Zero-padded tail columns (padding fallback only)
    contribute exactly zero to both sums (no conv bias), so dividing by the
    true P on the host gives correct statistics.
    """
    zg = jnp.dot(wg_ref[...], g_ref[...].astype(jnp.bfloat16),
                 preferred_element_type=jnp.float32)
    zx = jnp.dot(wx_ref[...], x_ref[...].astype(jnp.bfloat16),
                 preferred_element_type=jnp.float32)

    @pl.when(pl.program_id(1) == 0)
    def _init():
        stats_ref[...] = jnp.zeros_like(stats_ref)

    stats_ref[:, 0:1] += jnp.sum(zg, axis=1, keepdims=True)
    stats_ref[:, 1:2] += jnp.sum(zg * zg, axis=1, keepdims=True)
    stats_ref[:, 2:3] += jnp.sum(zx, axis=1, keepdims=True)
    stats_ref[:, 3:4] += jnp.sum(zx * zx, axis=1, keepdims=True)


def _bn_relu_psi_kernel(tl, dhw_true, needs_mask,
                        g_ref, x_ref, wg_ref, wx_ref, aff_ref, wpsi_ref,
                        s_ref, stats_ref):
    """Pass 2: a = relu(scale_g*(Wg@g) + scale_x*(Wx@x) + shift);
    s = wpsi . a; accumulate (masked) sum / sum-sq of s per batch element."""
    zg = jnp.dot(wg_ref[...], g_ref[...].astype(jnp.bfloat16),
                 preferred_element_type=jnp.float32)
    zx = jnp.dot(wx_ref[...], x_ref[...].astype(jnp.bfloat16),
                 preferred_element_type=jnp.float32)

    aff = aff_ref[...]                                   # (Fint, 4) f32
    a = jnp.maximum(zg * aff[:, 0:1] + zx * aff[:, 1:2] + aff[:, 2:3], 0.0)

    # psi 1x1 conv: contract over channels (sublanes) -> (1, tl)
    s = jnp.sum(a * wpsi_ref[...], axis=0, keepdims=True)
    s_ref[...] = s

    @pl.when(pl.program_id(1) == 0)
    def _init():
        stats_ref[...] = jnp.zeros_like(stats_ref)

    if needs_mask:
        # Padded tail columns get a nonzero BN shift; keep them out of the stats.
        col = (pl.program_id(1) * tl
               + jax.lax.broadcasted_iota(jnp.int32, (1, tl), 1))
        sm = jnp.where(col < dhw_true, s, 0.0)
    else:
        sm = s
    stats_ref[:, 0:1] += jnp.sum(sm, axis=1, keepdims=True)
    stats_ref[:, 1:2] += jnp.sum(sm * s, axis=1, keepdims=True)


def _gate_kernel(x_ref, s_ref, bn3_ref, o_ref):
    """Pass 3: out = x * sigmoid(BN3(s)). bn3 = (scale, shift) scalars in SMEM."""
    t = s_ref[...] * bn3_ref[0] + bn3_ref[1]             # (1, tl) f32
    psi = 1.0 / (1.0 + jnp.exp(-t))
    o_ref[...] = (x_ref[...] * psi).astype(o_ref.dtype)  # (Fg, tl) * (1, tl)


# ----------------------------------------------------------------------------
# Forward pass
# ----------------------------------------------------------------------------
def _choose_tile(dhw, target):
    """Largest lane tile <= target that keeps the passes pad/mask-free."""
    target = max(int(target), 128)
    if dhw <= target:
        return dhw                       # full extent: always a legal block dim
    t = (target // 128) * 128
    while t >= 128:
        if dhw % t == 0:
            return t                     # aligned divisor -> no padding needed
        t -= 128
    return (target // 128) * 128         # fallback: pad DHW up to multiple of tl


def attention_block_forward(params, g, x, *, target_tl=8192):
    N, Fl, D, H, W = g.shape
    Fg = x.shape[1]
    Fint = params["wg"].shape[0]
    dhw = D * H * W
    P = N * dhw

    # Free reshapes only: keep the native NCDHW layout, positions on the lane axis.
    g3 = g.reshape(N, Fl, dhw)
    x3 = x.reshape(N, Fg, dhw)

    tl = _choose_tile(dhw, target_tl)
    n_t = pl.cdiv(dhw, tl)
    dhw_pad = n_t * tl
    needs_pad = dhw_pad != dhw
    if needs_pad:                        # rare fallback path (not hit by demo)
        g3 = jnp.pad(g3, ((0, 0), (0, 0), (0, dhw_pad - dhw)))
        x3 = jnp.pad(x3, ((0, 0), (0, 0), (0, dhw_pad - dhw)))

    wg = params["wg"].astype(jnp.bfloat16)                # (Fint, Fl)
    wx = params["wx"].astype(jnp.bfloat16)                # (Fint, Fg)
    wpsi = params["wpsi"].astype(jnp.float32)             # (Fint, 1)

    grid = (N, n_t)

    # ---- Pass 1: fused 1x1 convs + per-batch-element BN partial statistics ----
    stats1 = pl.pallas_call(
        _conv_stats_kernel,
        out_shape=jax.ShapeDtypeStruct((N, Fint, 4), jnp.float32),
        grid=grid,
        in_specs=[
            pl.BlockSpec((None, Fl, tl), lambda n, i: (n, 0, i)),
            pl.BlockSpec((None, Fg, tl), lambda n, i: (n, 0, i)),
            pl.BlockSpec((Fint, Fl), lambda n, i: (0, 0)),
            pl.BlockSpec((Fint, Fg), lambda n, i: (0, 0)),
        ],
        out_specs=pl.BlockSpec((None, Fint, 4), lambda n, i: (n, 0, 0)),
        compiler_params=pltpu.CompilerParams(
            dimension_semantics=("parallel", "arbitrary")),
    )(g3, x3, wg, wx)

    stats1 = jnp.sum(stats1, axis=0)                      # combine per-core partials
    inv_p = 1.0 / P
    mean_g = stats1[:, 0] * inv_p
    var_g = stats1[:, 1] * inv_p - mean_g ** 2
    mean_x = stats1[:, 2] * inv_p
    var_x = stats1[:, 3] * inv_p - mean_x ** 2
    scale_g = params["bn_g_gamma"] * jax.lax.rsqrt(var_g + EPS)
    scale_x = params["bn_x_gamma"] * jax.lax.rsqrt(var_x + EPS)
    shift = (params["bn_g_beta"] - mean_g * scale_g
             + params["bn_x_beta"] - mean_x * scale_x)    # combined shift
    aff = jnp.stack([scale_g, scale_x, shift, jnp.zeros_like(shift)],
                    axis=1).astype(jnp.float32)           # (Fint, 4)

    # ---- Pass 2: BN + ReLU + psi conv + partial stats of s --------------------
    kern2 = functools.partial(_bn_relu_psi_kernel, tl, dhw, needs_pad)
    s, stats2 = pl.pallas_call(
        kern2,
        out_shape=(jax.ShapeDtypeStruct((N, 1, dhw_pad), jnp.float32),
                   jax.ShapeDtypeStruct((N, 1, 2), jnp.float32)),
        grid=grid,
        in_specs=[
            pl.BlockSpec((None, Fl, tl), lambda n, i: (n, 0, i)),
            pl.BlockSpec((None, Fg, tl), lambda n, i: (n, 0, i)),
            pl.BlockSpec((Fint, Fl), lambda n, i: (0, 0)),
            pl.BlockSpec((Fint, Fg), lambda n, i: (0, 0)),
            pl.BlockSpec((Fint, 4), lambda n, i: (0, 0)),
            pl.BlockSpec((Fint, 1), lambda n, i: (0, 0)),
        ],
        out_specs=(pl.BlockSpec((None, 1, tl), lambda n, i: (n, 0, i)),
                   pl.BlockSpec((None, 1, 2), lambda n, i: (n, 0, 0))),
        compiler_params=pltpu.CompilerParams(
            dimension_semantics=("parallel", "arbitrary")),
    )(g3, x3, wg, wx, aff, wpsi)

    stats2 = jnp.sum(stats2, axis=0)                      # (1, 2)
    mean_s = stats2[0, 0] * inv_p
    var_s = stats2[0, 1] * inv_p - mean_s ** 2
    scale_s = params["bn_psi_gamma"] * jax.lax.rsqrt(var_s + EPS)
    shift_s = params["bn_psi_beta"] - mean_s * scale_s
    bn3 = jnp.stack([scale_s, shift_s]).astype(jnp.float32)   # (2,) scalars (SMEM)

    # ---- Pass 3: sigmoid gate applied to x (fully parallel) --------------------
    out3 = pl.pallas_call(
        _gate_kernel,
        out_shape=jax.ShapeDtypeStruct((N, Fg, dhw_pad), x.dtype),
        grid=grid,
        in_specs=[
            pl.BlockSpec((None, Fg, tl), lambda n, i: (n, 0, i)),
            pl.BlockSpec((None, 1, tl), lambda n, i: (n, 0, i)),
            pl.BlockSpec(memory_space=pltpu.MemorySpace.SMEM),
        ],
        out_specs=pl.BlockSpec((None, Fg, tl), lambda n, i: (n, 0, i)),
        compiler_params=pltpu.CompilerParams(
            dimension_semantics=("parallel", "parallel")),
    )(x3, s, bn3)

    if needs_pad:
        out3 = out3[:, :, :dhw]
    return out3.reshape(N, Fg, D, H, W)                   # free reshape, NCDHW out
    # TODO(synk): eval-mode BatchNorm (running stats) would collapse this to two
    # passes; only training-mode batch statistics are implemented here.


# ----------------------------------------------------------------------------
# Parameters (deterministic synthetic init; shapes follow the PyTorch module)
# ----------------------------------------------------------------------------
def init_params(key, F_g, F_l, F_int):
    ks = jax.random.split(key, 9)
    return {
        # PyTorch Conv3d(Cin, Cout, 1) weight is (Cout, Cin, 1, 1, 1); used here
        # directly as (Cout, Cin).
        "wg": jax.random.normal(ks[0], (F_int, F_l), jnp.float32) * 0.1,
        "wx": jax.random.normal(ks[1], (F_int, F_g), jnp.float32) * 0.1,
        "wpsi": jax.random.normal(ks[2], (F_int, 1), jnp.float32) * 0.1,
        # Conv biases omitted: each conv is immediately followed by a
        # training-mode BatchNorm whose mean subtraction cancels them exactly.
        "bn_g_gamma": 1.0 + 0.1 * jax.random.normal(ks[3], (F_int,), jnp.float32),
        "bn_g_beta": 0.1 * jax.random.normal(ks[4], (F_int,), jnp.float32),
        "bn_x_gamma": 1.0 + 0.1 * jax.random.normal(ks[5], (F_int,), jnp.float32),
        "bn_x_beta": 0.1 * jax.random.normal(ks[6], (F_int,), jnp.float32),
        "bn_psi_gamma": 1.0 + 0.1 * jax.random.normal(ks[7], (), jnp.float32),
        "bn_psi_beta": 0.1 * jax.random.normal(ks[8], (), jnp.float32),
    }


# ----------------------------------------------------------------------------
# Pure-JAX reference (bf16-rounded matmul inputs to match the kernel MXU path)
# ----------------------------------------------------------------------------
def _reference_forward(params, g, x):
    N, Fl, D, H, W = g.shape
    Fg = x.shape[1]
    dhw = D * H * W
    g2 = g.reshape(N, Fl, dhw).astype(jnp.bfloat16).astype(jnp.float32)
    x2 = x.reshape(N, Fg, dhw).astype(jnp.bfloat16).astype(jnp.float32)
    wg = params["wg"].astype(jnp.bfloat16).astype(jnp.float32)
    wx = params["wx"].astype(jnp.bfloat16).astype(jnp.float32)

    def bn(z, gamma, beta):
        mean = jnp.mean(z, axis=(0, 2), keepdims=True)
        var = jnp.mean(z * z, axis=(0, 2), keepdims=True) - mean ** 2
        return (z - mean) * jax.lax.rsqrt(var + EPS) * gamma + beta

    zg = jnp.einsum("oc,ncp->nop", wg, g2)
    zx = jnp.einsum("oc,ncp->nop", wx, x2)
    a = jnp.maximum(
        bn(zg, params["bn_g_gamma"][None, :, None], params["bn_g_beta"][None, :, None])
        + bn(zx, params["bn_x_gamma"][None, :, None], params["bn_x_beta"][None, :, None]),
        0.0)
    s = jnp.einsum("ncp,co->nop", a, params["wpsi"])      # (N, 1, dhw)
    psi = jax.nn.sigmoid(bn(s, params["bn_psi_gamma"], params["bn_psi_beta"]))
    out = x.reshape(N, Fg, dhw) * psi
    return out.reshape(N, Fg, D, H, W)


# ----------------------------------------------------------------------------
if __name__ == "__main__":
    key = jax.random.PRNGKey(0)
    F_g, F_l, F_int = 16, 16, 16
    N, D, H, W = 2, 16, 16, 16

    k_g, k_x, k_p = jax.random.split(key, 3)
    g = jax.random.normal(k_g, (N, F_l, D, H, W), jnp.float32)
    x = jax.random.normal(k_x, (N, F_g, D, H, W), jnp.float32)
    params = init_params(k_p, F_g, F_l, F_int)

    out = attention_block_forward(params, g, x)
    out = jax.block_until_ready(out)

    assert out.shape == x.shape, (out.shape, x.shape)
    assert bool(jnp.all(jnp.isfinite(out)))

    ref = _reference_forward(params, g, x)
    max_err = float(jnp.max(jnp.abs(out - ref)))
    assert max_err < 2e-2, f"max abs error vs reference: {max_err}"

    print("KERNEL_OK")
</pallas_src>

<mosaic_0001>
module attributes {stable_mosaic.version = 11 : i64} {
  func.func @_conv_stats_kernel(%arg0: i32, %arg1: i32, %arg2: memref<1x16x4096xf32, #tpu.memory_space<vmem>>, %arg3: memref<1x16x4096xf32, #tpu.memory_space<vmem>>, %arg4: memref<16x16xbf16, #tpu.memory_space<vmem>>, %arg5: memref<16x16xbf16, #tpu.memory_space<vmem>>, %arg6: memref<1x16x4xf32, #tpu.memory_space<vmem>>) attributes {dimension_semantics = [#tpu.dimension_semantics<parallel>, #tpu.dimension_semantics<arbitrary>], iteration_bounds = array<i64: 2, 1>, scalar_prefetch = 0 : i64, scratch_operands = 0 : i64, tpu.core_type = #tpu.core_type<tc>, window_params = [{transform_indices = @transform_0, window_bounds = array<i64: 1, 16, 4096>}, {transform_indices = @transform_1, window_bounds = array<i64: 1, 16, 4096>}, {pipeline_mode = #tpu.pipeline_mode<synchronous>, transform_indices = @transform_2, window_bounds = array<i64: 16, 16>}, {pipeline_mode = #tpu.pipeline_mode<synchronous>, transform_indices = @transform_3, window_bounds = array<i64: 16, 16>}, {transform_indices = @transform_4, window_bounds = array<i64: 1, 16, 4>}]} {
    %c0 = arith.constant 0 : index
    %c0_0 = arith.constant 0 : index
    %0 = vector.load %arg4[%c0, %c0_0] : memref<16x16xbf16, #tpu.memory_space<vmem>>, vector<16x16xbf16>
    %c0_1 = arith.constant 0 : index
    %c0_2 = arith.constant 0 : index
    %c0_3 = arith.constant 0 : index
    %1 = vector.load %arg2[%c0_1, %c0_2, %c0_3] : memref<1x16x4096xf32, #tpu.memory_space<vmem>>, vector<1x16x4096xf32>
    %2 = vector.shape_cast %1 : vector<1x16x4096xf32> to vector<16x4096xf32>
    %3 = arith.truncf %2 : vector<16x4096xf32> to vector<16x4096xbf16>
    %cst = arith.constant dense<0.000000e+00> : vector<16x4096xf32>
    %4 = tpu.matmul %0, %3, %cst {dimension_numbers = #tpu.dot_dimension_numbers<[1], [0], [0], [1], [0, 0, 1, 1], [], []>} : vector<16x16xbf16>, vector<16x4096xbf16>, vector<16x4096xf32> -> vector<16x4096xf32>
    %c0_4 = arith.constant 0 : index
    %c0_5 = arith.constant 0 : index
    %5 = vector.load %arg5[%c0_4, %c0_5] : memref<16x16xbf16, #tpu.memory_space<vmem>>, vector<16x16xbf16>
    %c0_6 = arith.constant 0 : index
    %c0_7 = arith.constant 0 : index
    %c0_8 = arith.constant 0 : index
    %6 = vector.load %arg3[%c0_6, %c0_7, %c0_8] : memref<1x16x4096xf32, #tpu.memory_space<vmem>>, vector<1x16x4096xf32>
    %7 = vector.shape_cast %6 : vector<1x16x4096xf32> to vector<16x4096xf32>
    %8 = arith.truncf %7 : vector<16x4096xf32> to vector<16x4096xbf16>
    %cst_9 = arith.constant dense<0.000000e+00> : vector<16x4096xf32>
    %9 = tpu.matmul %5, %8, %cst_9 {dimension_numbers = #tpu.dot_dimension_numbers<[1], [0], [0], [1], [0, 0, 1, 1], [], []>} : vector<16x16xbf16>, vector<16x4096xbf16>, vector<16x4096xf32> -> vector<16x4096xf32>
    %c0_i32 = arith.constant 0 : i32
    %10 = arith.cmpi eq, %arg1, %c0_i32 : i32
    %11 = arith.extui %10 : i1 to i32
    %c0_i32_10 = arith.constant 0 : i32
    %12 = arith.cmpi ne, %11, %c0_i32_10 : i32
    scf.if %12 {
      %cst_36 = arith.constant 0.000000e+00 : f32
      %47 = vector.broadcast %cst_36 : f32 to vector<16x4xf32>
      %c0_37 = arith.constant 0 : index
      %c0_38 = arith.constant 0 : index
      %c0_39 = arith.constant 0 : index
      %48 = vector.load %arg6[%c0_37, %c0_38, %c0_39] : memref<1x16x4xf32, #tpu.memory_space<vmem>>, vector<1x16x4xf32>
      %49 = vector.shape_cast %48 : vector<1x16x4xf32> to vector<16x4xf32>
      %50 = vector.shape_cast %47 : vector<16x4xf32> to vector<1x16x4xf32>
      tpu.vector_store %arg6[%c0_37, %c0_38, %c0_39], %50 {strides = array<i32>} : memref<1x16x4xf32, #tpu.memory_space<vmem>>, vector<1x16x4xf32>,
    } else {
    }
    %c0_11 = arith.constant 0 : index
    %c0_12 = arith.constant 0 : index
    %c0_13 = arith.constant 0 : index
    %13 = vector.load %arg6[%c0_11, %c0_12, %c0_13] : memref<1x16x4xf32, #tpu.memory_space<vmem>>, vector<1x16x1xf32>
    %14 = vector.shape_cast %13 : vector<1x16x1xf32> to vector<16x1xf32>
    %cst_14 = arith.constant dense<0.000000e+00> : vector<16xf32>
    %15 = vector.multi_reduction <add>, %4, %cst_14 [1] : vector<16x4096xf32> to vector<16xf32>
    %16 = vector.shape_cast %15 : vector<16xf32> to vector<16x1xf32>
    %17 = arith.addf %14, %16 : vector<16x1xf32>
    %c0_15 = arith.constant 0 : index
    %c0_16 = arith.constant 0 : index
    %c0_17 = arith.constant 0 : index
    %18 = vector.load %arg6[%c0_15, %c0_16, %c0_17] : memref<1x16x4xf32, #tpu.memory_space<vmem>>, vector<1x16x1xf32>
    %19 = vector.shape_cast %18 : vector<1x16x1xf32> to vector<16x1xf32>
    %20 = vector.shape_cast %17 : vector<16x1xf32> to vector<1x16x1xf32>
    tpu.vector_store %arg6[%c0_15, %c0_16, %c0_17], %20 {strides = array<i32>} : memref<1x16x4xf32, #tpu.memory_space<vmem>>, vector<1x16x1xf32>,
    %c0_18 = arith.constant 0 : index
    %c0_19 = arith.constant 0 : index
    %c1 = arith.constant 1 : index
    %21 = vector.load %arg6[%c0_18, %c0_19, %c1] : memref<1x16x4xf32, #tpu.memory_space<vmem>>, vector<1x16x1xf32>
    %22 = vector.shape_cast %21 : vector<1x16x1xf32> to vector<16x1xf32>
    %23 = arith.mulf %4, %4 : vector<16x4096xf32>
    %cst_20 = arith.constant dense<0.000000e+00> : vector<16xf32>
    %24 = vector.multi_reduction <add>, %23, %cst_20 [1] : vector<16x4096xf32> to vector<16xf32>
    %25 = vector.shape_cast %24 : vector<16xf32> to vector<16x1xf32>
    %26 = arith.addf %22, %25 : vector<16x1xf32>
    %c0_21 = arith.constant 0 : index
    %c0_22 = arith.constant 0 : index
    %c1_23 = arith.constant 1 : index
    %27 = vector.load %arg6[%c0_21, %c0_22, %c1_23] : memref<1x16x4xf32, #tpu.memory_space<vmem>>, vector<1x16x1xf32>
    %28 = vector.shape_cast %27 : vector<1x16x1xf32> to vector<16x1xf32>
    %29 = vector.shape_cast %26 : vector<16x1xf32> to vector<1x16x1xf32>
    tpu.vector_store %arg6[%c0_21, %c0_22, %c1_23], %29 {strides = array<i32>} : memref<1x16x4xf32, #tpu.memory_space<vmem>>, vector<1x16x1xf32>,
    %c0_24 = arith.constant 0 : index
    %c0_25 = arith.constant 0 : index
    %c2 = arith.constant 2 : index
    %30 = vector.load %arg6[%c0_24, %c0_25, %c2] : memref<1x16x4xf32, #tpu.memory_space<vmem>>, vector<1x16x1xf32>
    %31 = vector.shape_cast %30 : vector<1x16x1xf32> to vector<16x1xf32>
    %cst_26 = arith.constant dense<0.000000e+00> : vector<16xf32>
    %32 = vector.multi_reduction <add>, %9, %cst_26 [1] : vector<16x4096xf32> to vector<16xf32>
    %33 = vector.shape_cast %32 : vector<16xf32> to vector<16x1xf32>
    %34 = arith.addf %31, %33 : vector<16x1xf32>
    %c0_27 = arith.constant 0 : index
    %c0_28 = arith.constant 0 : index
    %c2_29 = arith.constant 2 : index
    %35 = vector.load %arg6[%c0_27, %c0_28, %c2_29] : memref<1x16x4xf32, #tpu.memory_space<vmem>>, vector<1x16x1xf32>
    %36 = vector.shape_cast %35 : vector<1x16x1xf32> to vector<16x1xf32>
    %37 = vector.shape_cast %34 : vector<16x1xf32> to vector<1x16x1xf32>
    tpu.vector_store %arg6[%c0_27, %c0_28, %c2_29], %37 {strides = array<i32>} : memref<1x16x4xf32, #tpu.memory_space<vmem>>, vector<1x16x1xf32>,
    %c0_30 = arith.constant 0 : index
    %c0_31 = arith.constant 0 : index
    %c3 = arith.constant 3 : index
    %38 = vector.load %arg6[%c0_30, %c0_31, %c3] : memref<1x16x4xf32, #tpu.memory_space<vmem>>, vector<1x16x1xf32>
    %39 = vector.shape_cast %38 : vector<1x16x1xf32> to vector<16x1xf32>
    %40 = arith.mulf %9, %9 : vector<16x4096xf32>
    %cst_32 = arith.constant dense<0.000000e+00> : vector<16xf32>
    %41 = vector.multi_reduction <add>, %40, %cst_32 [1] : vector<16x4096xf32> to vector<16xf32>
    %42 = vector.shape_cast %41 : vector<16xf32> to vector<16x1xf32>
    %43 = arith.addf %39, %42 : vector<16x1xf32>
    %c0_33 = arith.constant 0 : index
    %c0_34 = arith.constant 0 : index
    %c3_35 = arith.constant 3 : index
    %44 = vector.load %arg6[%c0_33, %c0_34, %c3_35] : memref<1x16x4xf32, #tpu.memory_space<vmem>>, vector<1x16x1xf32>
    %45 = vector.shape_cast %44 : vector<1x16x1xf32> to vector<16x1xf32>
    %46 = vector.shape_cast %43 : vector<16x1xf32> to vector<1x16x1xf32>
    tpu.vector_store %arg6[%c0_33, %c0_34, %c3_35], %46 {strides = array<i32>} : memref<1x16x4xf32, #tpu.memory_space<vmem>>, vector<1x16x1xf32>,
    return
  }
  func.func @transform_0(%arg0: i32, %arg1: i32) -> (i32, i32, i32) {
    %c0_i32 = arith.constant 0 : i32
    %c0_i32_0 = arith.constant 0 : i32
    return %arg0, %c0_i32, %arg1 : i32, i32, i32
  }
  func.func @transform_1(%arg0: i32, %arg1: i32) -> (i32, i32, i32) {
    %c0_i32 = arith.constant 0 : i32
    %c0_i32_0 = arith.constant 0 : i32
    return %arg0, %c0_i32, %arg1 : i32, i32, i32
  }
  func.func @transform_2(%arg0: i32, %arg1: i32) -> (i32, i32) {
    %c0_i32 = arith.constant 0 : i32
    %c0_i32_0 = arith.constant 0 : i32
    %c0_i32_1 = arith.constant 0 : i32
    return %c0_i32, %c0_i32_0 : i32, i32
  }
  func.func @transform_3(%arg0: i32, %arg1: i32) -> (i32, i32) {
    %c0_i32 = arith.constant 0 : i32
    %c0_i32_0 = arith.constant 0 : i32
    %c0_i32_1 = arith.constant 0 : i32
    return %c0_i32, %c0_i32_0 : i32, i32
  }
  func.func @transform_4(%arg0: i32, %arg1: i32) -> (i32, i32, i32) {
    %c0_i32 = arith.constant 0 : i32
    %c0_i32_0 = arith.constant 0 : i32
    %c0_i32_1 = arith.constant 0 : i32
    return %arg0, %c0_i32, %c0_i32_0 : i32, i32, i32
  }
}

</mosaic_0001>

<bundles_post_ra>
// kernel: tpu_custom_call.1
= control target key start
LH: loop header
LB: loop body
LE: loop exit
PB: predicated region body
PF: predicated region fallthrough
CT: control target
= control target key end

     0   :  { %s2947_s0 = inlined_call_operand.hbm [shape: f32[2,16,4096], index: 0, kind: input, shape index: {}]   ;;  %s2948_s1 = inlined_call_operand.hbm [shape: f32[2,16,4096], index: 1, kind: input, shape index: {}]   ;;  %s2949_s2 = inlined_call_operand.hbm [shape: bf16[16,16], index: 2, kind: input, shape index: {}]   ;;  %s2950_s3 = inlined_call_operand.hbm [shape: bf16[16,16], index: 3, kind: input, shape index: {}]   ;;  %s2951_s4 = inlined_call_operand.vmem [shape: f32[2,16,4], index: 4, kind: output, shape index: {}]  }
   0x1   :  { %2953 = sst [smem:[#allocation13_spill]] %s2949_s2 }
   0x2   :  { %9 = vsyncpa [#allocation3], 0 }
   0x3   :  { %11 = vsyncpa [#allocation3 + $0x1], 0 }
   0x4   :  { %12 = vsyncpa [#allocation5], 0 }
   0x5   :  { %14 = vsyncpa [#allocation5 + $0x1], 0 }
   0x6   :  { %15 = vsyncpa [#allocation8], 0  ;;  %s2377_s15 = smov 0   ;;  %s2379_s16 = smov 0  }
   0x7   :  { %s2381_s17 = smov 0   ;;  %s2383_s18 = smov 0  }
   0x8   :  { %s2385_s19 = smov 0   ;;  %s2387_s20 = smov 0  }
   0x9 LB: > { %s2952_s21 = sadd.s32 4294967295, %s2343_s20   ;;  %p55_p0 = scmp.ne.s32.totalorder %s2327_s16, %s2323_s15  ;;  %s2343_s20 = sphi %s2387_s20, %s21_s20   ;;  %s2339_s19 = sphi %s2385_s19, %s2964_s19   ;;  %s2335_s18 = sphi %s2383_s18, %s2963_s18   ;;  %s2331_s17 = sphi %s2381_s17, %s2962_s17   ;;  %s2327_s16 = sphi %s2379_s16, %s2961_s16   ;;  %s2323_s15 = sphi %s2377_s15, %s2960_s15  }
   0xa   : > { %p2409_p1 = scmp.eq.s32.totalorder %s2952_s21, 0  ;;  %p1979_p2 = scmp.ge.s32.totalorder %s2343_s20, 1 }
   0xb   : > { %p162_p3 = scmp.lt.s32.totalorder %s2343_s20, 3  ;;  %s2956_s2 = sld [smem:[#allocation13_spill]] }
   0xc   : > { %p2417_p4 = por %p2409_p1, %p55_p0  ;;  %s2345_s28 = smov [#allocation6]  }
   0xd   : > { %p2424_p5 = pnand %p1979_p2, %p162_p3  ;;  %s175_s29 = sshll.u32 %s2345_s28, 4  ;;  %s176_s29 = int_to_ptr.vmem [resolvable:$true] %s175_s29 }
   0xe   : > { %s187_s6 = sshll.u32 %s2950_s3, 4  ;;  %s2346_s7 = smov 64   ;;  %s188_s6 = int_to_ptr.hbm [resolvable:$true] %s187_s6 }
   0xf   : > { %p2087_p6 = pneg %p2424_p5  ;;  %s2347_s8 = smov 4  }
  0x10   : > { %s2348_s9 = smov [#allocation7]   ;;  %s33_s11 = sadd.s32 1, %s2339_s19 }
  0x11   : > { %s173_s26 = sshll.u32 %s2956_s2, 4  ;;  %p2088_p7 = pnand %p2087_p6, %p2409_p1  ;;  %s174_s26 = int_to_ptr.hbm [resolvable:$true] %s173_s26 }
  0x12   : > { %s189_s10 = sshll.u32 %s2348_s9, 4  ;;  %s42_s12 = sadd.s32 1, %s2331_s17  ;;  %s190_s10 = int_to_ptr.vmem [resolvable:$true] %s189_s10 }
  0x13   : > { %2090 = dma.hbm_to_vmem [thread:$0]  (!%p2088_p7), %s174_s26, 128, %s176_s29, [#allocation5], %s2346_s7, %s2346_s7, %s2347_s8  }
  0x14   : > { %2093 = dma.hbm_to_vmem [thread:$0]  (!%p2088_p7), %s188_s6, 128, %s190_s10, [#allocation8], %s2346_s7, %s2346_s7, %s2347_s8  }
  0x15   : > { %p35_p8 = scmp.ge.s32.totalorder %s33_s11, 2  ;;  %p49_p9 = scmp.ne.s32.totalorder %s2331_s17, %s2327_s16 }
  0x16   : > { %p50_p10 = scmp.eq.s32.totalorder %s2343_s20, 0  ;;  %p2103_p11 = scmp.lt.s32.totalorder %s2343_s20, 2 }
  0x17   : > { %s2966_s11 = smov (%p35_p8, %s33_s11), 0  ;;  %s203_s14 = sand.u32 1, %s2331_s17  }
  0x18   : > { %p2443_p12 = por %p50_p10, %p49_p9  ;;  %s37_s15 = ssub.s32 %s2339_s19, %s2966_s11 }
  0x19   : > { %p40_p13 = scmp.eq.s32.totalorder %s37_s15, 0  ;;  %s1983_s24 = sshll.u32 %s203_s14, 9 }
  0x1a   : > { %s2070_s25 = sshll.u32 %s2339_s19, 9  ;;  %s207_s5 = scalar_lea.vmem [#allocation2], %s1983_s24 }
  0x1b   : > { %s2452_s26 = scalar_select %p40_p13, %s2331_s17, %s42_s12  }
  0x1c   : > { %s214_s30 = scalar_lea.hbm %s2947_s0, %s2070_s25  ;;  %s217_s6 = sshll.u32 %s207_s5, 4  ;;  %s218_s6 = int_to_ptr.vmem [resolvable:$true] %s217_s6 }
  0x1d   : > { %s215_s7 = sshll.u32 %s214_s30, 4  ;;  %p2095_p0 = pnand %p2103_p11, %p2443_p12  ;;  %s216_s7 = int_to_ptr.hbm [resolvable:$true] %s215_s7 }
  0x1e   : > { %s204_s8 = scalar_lea.sflag [#allocation3], %s203_s14  ;;  %s2349_s9 = smov 4096  }
  0x1f   : > { %s2350_s10 = smov 256   ;;  %s238_s21 = scalar_lea.hbm %s2948_s1, %s2070_s25 }
  0x20   : > { %2097 = dma.hbm_to_vmem [thread:$0]  (!%p2095_p0), %s216_s7, 8192, %s218_s6, %s204_s8, %s2349_s9, %s2349_s9, %s2350_s10  }
  0x21   : > { %s231_s2 = scalar_lea.vmem [#allocation4], %s1983_s24  ;;  %s239_s29 = sshll.u32 %s238_s21, 4  ;;  %s240_s29 = int_to_ptr.hbm [resolvable:$true] %s239_s29 }
  0x22   : > { %s241_s28 = sshll.u32 %s231_s2, 4  ;;  %s227_s5 = sand.u32 1, %s2343_s20   ;;  %s242_s28 = int_to_ptr.vmem [resolvable:$true] %s241_s28 }
  0x23   : > { %s228_s30 = scalar_lea.sflag [#allocation5], %s227_s5  ;;  %253 = sbr.rel (%p2424_p5) target bundleno = 570 (0x23a), region = 36 }
  0x24   : > { %2100 = dma.hbm_to_vmem [thread:$0]  (!%p2095_p0), %s240_s29, 8192, %s242_s28, %s228_s30, %s2349_s9, %s2349_s9, %s2350_s10  }
  0x25   : > { %s255_s13 = sand.u32 (!%p2424_p5), 1, %s2327_s16  }
  0x26   : > { %s1990_s14 = sshll.u32 (!%p2424_p5), %s255_s13, 9  ;;  %s256_s6 = scalar_lea.sflag (!%p2424_p5), [#allocation3], %s255_s13 }
  0x27   : > { %s2468_s7 = scalar_lea.vmem (!%p2424_p5), [#allocation2], %s1990_s14 }
  0x28   : > { %2306 = dma.done.wait (%p2417_p4), %s256_s6, 8192  }
  0x29   : > { %2308 = vsyncadd (%p2417_p4), %s256_s6, 4294959104  ;;  %s2959_s2 = sadd.s32 4294967295, %s2343_s20   ;;  %s2476_s25 = scalar_lea.vmem [#allocation4], %s1990_s14 }
  0x2a   : > { %s265_s21 = sand.u32 1, %s2959_s2  }
  0x2b   : > { %s266_s24 = scalar_lea.sflag [#allocation5], %s265_s21 }
  0x2c   : > { %2310 = dma.done.wait (%p2417_p4), %s266_s24, 8192  }
  0x2d   : > { %2312 = vsyncadd (%p2417_p4), %s266_s24, 4294959104 }
  0x2e   : > { %2314 = dma.done.wait (%p2409_p1), [#allocation5], 128  }
  0x2f   : > { %2316 = vsyncadd (%p2409_p1), [#allocation5], 4294967168 }
  0x30   : > { %2318 = dma.done.wait (%p2409_p1), [#allocation8], 128  }
  0x31   : > { %2320 = vsyncadd (%p2409_p1), [#allocation8], 4294967168  ;;  %v320_v0 = vld [vmem:[%s2468_s7] sm:$0xff]  ;;  %v321_v2 = vld [vmem:[%s2468_s7 + $0x8] sm:$0xff]  ;;  %vm421_vm0 = vcmask 130048   ;;  %p312_p1 = scmp.lt.s32.totalorder %s2335_s18, 1 }
  0x32   : > { %v352_v1 = vld [vmem:[%s2468_s7 + $0x100] sm:$0xff]  ;;  %v353_v4 = vld [vmem:[%s2468_s7 + $0x108] sm:$0xff]  ;;  %v322_v5 = vld [vmem:[%s2468_s7 + $0x10] sm:$0xff]  ;;  %vm1431_vm1 = vcmask 31744   ;;  %vm1504_vm2 = vcmask 7168   ;;  %vm1641_vm3 = vcmask 15368  }
  0x33   : > { %v384_v3 = vpack.c.bf16 %v352_v1, %v320_v0  ;;  %v354_v6 = vld [vmem:[%s2468_s7 + $0x110] sm:$0xff]  ;;  %v385_v7 = vpack.c.bf16 %v353_v4, %v321_v2  ;;  %v323_v9 = vld [vmem:[%s2468_s7 + $0x18] sm:$0xff]  ;;  %v2498_v11 = vld [vmem:[#allocation6] sm:$0xff]  ;;  %s2968_s18 = smov (!%p312_p1, %s2335_s18), 1  ;;  %vm1714_vm4 = vcmask 23568   ;;  %vm1851_vm5 = vcmask 31768  }
  0x34   : > { %v386_v8 = vpack.c.bf16 %v354_v6, %v322_v5  ;;  %v355_v10 = vld [vmem:[%s2468_s7 + $0x118] sm:$0xff]  ;;  %v326_v13 = vld [vmem:[%s2468_s7 + $0x30] sm:$0xff]  ;;  %v324_v15 = vld [vmem:[%s2468_s7 + $0x20] sm:$0xff]  ;;  %s2072_s22 = sshll.u32 %s2968_s18, 4 }
  0x35   : > { %432 = vmatpush.bf16.msra.mxu0 %v384_v3  ;;  %v387_v12 = vpack.c.bf16 %v355_v10, %v323_v9  ;;  %v358_v14 = vld [vmem:[%s2468_s7 + $0x130] sm:$0xff]  ;;  %446 = vmatpush.bf16.msra.mxu1 %v385_v7  ;;  %v356_v17 = vld [vmem:[%s2468_s7 + $0x120] sm:$0xff]  ;;  %v327_v18 = vld [vmem:[%s2468_s7 + $0x38] sm:$0xff]  ;;  %s2905_s8 = scalar_lea.vmem %s2951_s4, %s2072_s22 }
  0x36   : > { %460 = vmatpush.bf16.msra.mxu2 %v386_v8  ;;  %v390_v16 = vpack.c.bf16 %v358_v14, %v326_v13  ;;  %v359_v19 = vld [vmem:[%s2468_s7 + $0x138] sm:$0xff]  ;;  %v388_v20 = vpack.c.bf16 %v356_v17, %v324_v15  ;;  %v325_v22 = vld [vmem:[%s2468_s7 + $0x28] sm:$0xff]  ;;  %v330_v24 = vld [vmem:[%s2468_s7 + $0x50] sm:$0xff] }
  0x37   : > { %474 = vmatpush.bf16.msra.mxu3 %v387_v12  ;;  %v391_v21 = vpack.c.bf16 %v359_v19, %v327_v18  ;;  %v357_v23 = vld [vmem:[%s2468_s7 + $0x128] sm:$0xff]  ;;  %v362_v26 = vld [vmem:[%s2468_s7 + $0x150] sm:$0xff]  ;;  %v328_v27 = vld [vmem:[%s2468_s7 + $0x40] sm:$0xff] }
  0x38   : > { %2000 = vmatmul.msk.bf16.vlgmr.msra.gmra.mxu0 %vm421_vm0, %v2498_v11  ;;  %v389_v25 = vpack.c.bf16 %v357_v23, %v325_v22  ;;  %v360_v28 = vld [vmem:[%s2468_s7 + $0x140] sm:$0xff]  ;;  %2001 = vmatmul.msk.bf16.vlgmr.msra.gmra.mxu1 %vm421_vm0, %v2498_v11  ;;  %v394_v29 = vpack.c.bf16 %v362_v26, %v330_v24  ;;  %v331_v31 = vld [vmem:[%s2468_s7 + $0x58] sm:$0xff]  ;;  %v329_v33 = vld [vmem:[%s2468_s7 + $0x48] sm:$0xff] }
  0x39   : > { %2002 = vmatmul.msk.bf16.vlgmr.msra.gmra.mxu2 %vm421_vm0, %v2498_v11  ;;  %v392_v30 = vpack.c.bf16 %v360_v28, %v328_v27  ;;  %v363_v32 = vld [vmem:[%s2468_s7 + $0x158] sm:$0xff]  ;;  %488 = vmatpush.bf16.msrb.mxu0 %v388_v20  ;;  %v361_v35 = vld [vmem:[%s2468_s7 + $0x148] sm:$0xff]  ;;  %v334_v37 = vld [vmem:[%s2468_s7 + $0x70] sm:$0xff] }
  0x3a   : > { %516 = vmatpush.bf16.msrb.mxu2 %v390_v16  ;;  %2003 = vmatmul.msk.bf16.vlgmr.msra.gmra.mxu3 %vm421_vm0, %v2498_v11  ;;  %v395_v34 = vpack.c.bf16 %v363_v32, %v331_v31  ;;  %v393_v36 = vpack.c.bf16 %v361_v35, %v329_v33  ;;  %v366_v38 = vld [vmem:[%s2468_s7 + $0x170] sm:$0xff]  ;;  %v332_v39 = vld [vmem:[%s2468_s7 + $0x60] sm:$0xff]  ;;  %v335_v41 = vld [vmem:[%s2468_s7 + $0x78] sm:$0xff] }
  0x3b   : > { %530 = vmatpush.bf16.msrb.mxu3 %v391_v21  ;;  %502 = vmatpush.bf16.msrb.mxu1 %v389_v25  ;;  %v364_v40 = vld [vmem:[%s2468_s7 + $0x160] sm:$0xff]  ;;  %v367_v42 = vld [vmem:[%s2468_s7 + $0x178] sm:$0xff]  ;;  %v333_v43 = vld [vmem:[%s2468_s7 + $0x68] sm:$0xff]  ;;  %v398_v45 = vpack.c.bf16 %v366_v38, %v334_v37 }
  0x3c   : > { %v365_v44 = vld [vmem:[%s2468_s7 + $0x168] sm:$0xff]  ;;  %v396_v46 = vpack.c.bf16 %v364_v40, %v332_v39  ;;  %v399_v47 = vpack.c.bf16 %v367_v42, %v335_v41  ;;  %v338_v49 = vld [vmem:[%s2468_s7 + $0x90] sm:$0xff]  ;;  %v336_v51 = vld [vmem:[%s2468_s7 + $0x80] sm:$0xff] }
  0x3d   : > { %544 = vmatpush.bf16.msra.mxu0 %v392_v30  ;;  %v397_v48 = vpack.c.bf16 %v365_v44, %v333_v43  ;;  %v370_v50 = vld [vmem:[%s2468_s7 + $0x190] sm:$0xff]  ;;  %v368_v52 = vld [vmem:[%s2468_s7 + $0x180] sm:$0xff]  ;;  %v339_v53 = vld [vmem:[%s2468_s7 + $0x98] sm:$0xff] }
  0x3e   : > { %572 = vmatpush.bf16.msra.mxu2 %v394_v29  ;;  %v371_v54 = vld [vmem:[%s2468_s7 + $0x198] sm:$0xff]  ;;  %v337_v55 = vld [vmem:[%s2468_s7 + $0x88] sm:$0xff]  ;;  %v402_v57 = vpack.c.bf16 %v370_v50, %v338_v49  ;;  %v400_v58 = vpack.c.bf16 %v368_v52, %v336_v51  ;;  %v342_v61 = vld [vmem:[%s2468_s7 + $0xb0] sm:$0xff] }
  0x3f   : > { %586 = vmatpush.bf16.msra.mxu3 %v395_v34  ;;  %558 = vmatpush.bf16.msra.mxu1 %v393_v36  ;;  %v369_v56 = vld [vmem:[%s2468_s7 + $0x188] sm:$0xff]  ;;  %v403_v59 = vpack.c.bf16 %v371_v54, %v339_v53  ;;  %v374_v62 = vld [vmem:[%s2468_s7 + $0x1b0] sm:$0xff]  ;;  %v340_v63 = vld [vmem:[%s2468_s7 + $0xa0] sm:$0xff] }
  0x40   : > { %v401_v60 = vpack.c.bf16 %v369_v56, %v337_v55  ;;  %v372_v0 = vld [vmem:[%s2468_s7 + $0x1a0] sm:$0xff]  ;;  %v343_v1 = vld [vmem:[%s2468_s7 + $0xb8] sm:$0xff]  ;;  %v341_v3 = vld [vmem:[%s2468_s7 + $0xa8] sm:$0xff]  ;;  %v406_v5 = vpack.c.bf16 %v374_v62, %v342_v61 }
  0x41   : > { %v375_v2 = vld [vmem:[%s2468_s7 + $0x1b8] sm:$0xff]  ;;  %v373_v4 = vld [vmem:[%s2468_s7 + $0x1a8] sm:$0xff]  ;;  %v404_v6 = vpack.c.bf16 %v372_v0, %v340_v63  ;;  %v346_v9 = vld [vmem:[%s2468_s7 + $0xd0] sm:$0xff] }
  0x42   : > { %v407_v7 = vpack.c.bf16 %v375_v2, %v343_v1  ;;  %v405_v8 = vpack.c.bf16 %v373_v4, %v341_v3  ;;  %v378_v10 = vld [vmem:[%s2468_s7 + $0x1d0] sm:$0xff]  ;;  %v344_v12 = vld [vmem:[%s2468_s7 + $0xc0] sm:$0xff]  ;;  %v347_v14 = vld [vmem:[%s2468_s7 + $0xd8] sm:$0xff] }
  0x43   : > { %v376_v13 = vld [vmem:[%s2468_s7 + $0x1c0] sm:$0xff]  ;;  %v379_v15 = vld [vmem:[%s2468_s7 + $0x1d8] sm:$0xff]  ;;  %v345_v16 = vld [vmem:[%s2468_s7 + $0xc8] sm:$0xff]  ;;  %v410_v18 = vpack.c.bf16 %v378_v10, %v346_v9 }
  0x44   : > { %v377_v17 = vld [vmem:[%s2468_s7 + $0x1c8] sm:$0xff]  ;;  %v408_v19 = vpack.c.bf16 %v376_v13, %v344_v12  ;;  %v411_v20 = vpack.c.bf16 %v379_v15, %v347_v14  ;;  %v350_v22 = vld [vmem:[%s2468_s7 + $0xf0] sm:$0xff]  ;;  %v348_v24 = vld [vmem:[%s2468_s7 + $0xe0] sm:$0xff] }
  0x45   : > { %v409_v21 = vpack.c.bf16 %v377_v17, %v345_v16  ;;  %v382_v23 = vld [vmem:[%s2468_s7 + $0x1f0] sm:$0xff]  ;;  %v380_v25 = vld [vmem:[%s2468_s7 + $0x1e0] sm:$0xff]  ;;  %v351_v26 = vld [vmem:[%s2468_s7 + $0xf8] sm:$0xff] }
  0x46   : > { %v383_v27 = vld [vmem:[%s2468_s7 + $0x1f8] sm:$0xff]  ;;  %v349_v28 = vld [vmem:[%s2468_s7 + $0xe8] sm:$0xff]  ;;  %v414_v30 = vpack.c.bf16 %v382_v23, %v350_v22  ;;  %v412_v31 = vpack.c.bf16 %v380_v25, %v348_v24  ;;  %v877_v34 = vld [vmem:[%s2476_s25 + $0x10] sm:$0xff] }
  0x47   : > { %v381_v29 = vld [vmem:[%s2468_s7 + $0x1e8] sm:$0xff]  ;;  %v415_v32 = vpack.c.bf16 %v383_v27, %v351_v26  ;;  %v909_v35 = vld [vmem:[%s2476_s25 + $0x110] sm:$0xff]  ;;  %v875_v36 = vld [vmem:[%s2476_s25] sm:$0xff] }
  0x48   : > { %2004 = vmatmul.msk.bf16.vlgmr.msrb.gmra.mxu0 %vm421_vm0, %v2498_v11  ;;  %2005 = vmatmul.msk.bf16.vlgmr.msrb.gmra.mxu1 %vm421_vm0, %v2498_v11  ;;  %v413_v33 = vpack.c.bf16 %v381_v29, %v349_v28  ;;  %v907_v37 = vld [vmem:[%s2476_s25 + $0x100] sm:$0xff]  ;;  %v878_v38 = vld [vmem:[%s2476_s25 + $0x18] sm:$0xff]  ;;  %v876_v40 = vld [vmem:[%s2476_s25 + $0x8] sm:$0xff]  ;;  %v941_v42 = vpack.c.bf16 %v909_v35, %v877_v34 }
  0x49   : > { %2006 = vmatmul.msk.bf16.vlgmr.msrb.gmra.mxu2 %vm421_vm0, %v2498_v11  ;;  %600 = vmatpush.bf16.msrb.mxu0 %v396_v46  ;;  %v910_v39 = vld [vmem:[%s2476_s25 + $0x118] sm:$0xff]  ;;  %v908_v41 = vld [vmem:[%s2476_s25 + $0x108] sm:$0xff]  ;;  %v939_v43 = vpack.c.bf16 %v907_v37, %v875_v36  ;;  %v881_v46 = vld [vmem:[%s2476_s25 + $0x30] sm:$0xff] }
  0x4a   : > { %2007 = vmatmul.msk.bf16.vlgmr.msrb.gmra.mxu3 %vm421_vm0, %v2498_v11  ;;  %628 = vmatpush.bf16.msrb.mxu2 %v398_v45  ;;  %v942_v44 = vpack.c.bf16 %v910_v39, %v878_v38  ;;  %v940_v45 = vpack.c.bf16 %v908_v41, %v876_v40  ;;  %v911_v49 = vld [vmem:[%s2476_s25 + $0x120] sm:$0xff]  ;;  %v882_v50 = vld [vmem:[%s2476_s25 + $0x38] sm:$0xff]  ;;  %v880_v52 = vld [vmem:[%s2476_s25 + $0x28] sm:$0xff] }
  0x4b   : > { %642 = vmatpush.bf16.msrb.mxu3 %v399_v47  ;;  %614 = vmatpush.bf16.msrb.mxu1 %v397_v48  ;;  %v913_v47 = vld [vmem:[%s2476_s25 + $0x130] sm:$0xff]  ;;  %v879_v48 = vld [vmem:[%s2476_s25 + $0x20] sm:$0xff]  ;;  %v914_v51 = vld [vmem:[%s2476_s25 + $0x138] sm:$0xff] }
  0x4c   : > { %v912_v53 = vld [vmem:[%s2476_s25 + $0x128] sm:$0xff]  ;;  %v945_v54 = vpack.c.bf16 %v913_v47, %v881_v46  ;;  %v943_v55 = vpack.c.bf16 %v911_v49, %v879_v48  ;;  %v946_v56 = vpack.c.bf16 %v914_v51, %v882_v50  ;;  %v883_v61 = vld [vmem:[%s2476_s25 + $0x40] sm:$0xff]  ;;  %v886_v63 = vld [vmem:[%s2476_s25 + $0x58] sm:$0xff] }
  0x4d   : > { %v915_v62 = vld [vmem:[%s2476_s25 + $0x140] sm:$0xff]  ;;  %v918_v0 = vld [vmem:[%s2476_s25 + $0x158] sm:$0xff]  ;;  %v884_v2 = vld [vmem:[%s2476_s25 + $0x48] sm:$0xff] }
  0x4e   : > { %v916_v3 = vld [vmem:[%s2476_s25 + $0x148] sm:$0xff]  ;;  %v889_v13 = vld [vmem:[%s2476_s25 + $0x70] sm:$0xff]  ;;  %v887_v15 = vld [vmem:[%s2476_s25 + $0x60] sm:$0xff] }
  0x4f   : > { %v921_v14 = vld [vmem:[%s2476_s25 + $0x170] sm:$0xff]  ;;  %v919_v17 = vld [vmem:[%s2476_s25 + $0x160] sm:$0xff]  ;;  %v888_v22 = vld [vmem:[%s2476_s25 + $0x68] sm:$0xff] }
  0x50   : > { %v920_v23 = vld [vmem:[%s2476_s25 + $0x168] sm:$0xff]  ;;  %v953_v25 = vpack.c.bf16 %v921_v14, %v889_v13  ;;  %v951_v26 = vpack.c.bf16 %v919_v17, %v887_v15  ;;  %v925_v34 = vld [vmem:[%s2476_s25 + $0x190] sm:$0xff]  ;;  %v891_v35 = vld [vmem:[%s2476_s25 + $0x80] sm:$0xff] }
  0x51   : > { %v952_v28 = vpack.c.bf16 %v920_v23, %v888_v22  ;;  %v923_v37 = vld [vmem:[%s2476_s25 + $0x180] sm:$0xff]  ;;  %v894_v38 = vld [vmem:[%s2476_s25 + $0x98] sm:$0xff]  ;;  %v897_v13 = vld [vmem:[%s2476_s25 + $0xb0] sm:$0xff] }
  0x52   : > { %v926_v39 = vld [vmem:[%s2476_s25 + $0x198] sm:$0xff]  ;;  %v955_v50 = vpack.c.bf16 %v923_v37, %v891_v35  ;;  %v929_v14 = vld [vmem:[%s2476_s25 + $0x1b0] sm:$0xff]  ;;  %v895_v15 = vld [vmem:[%s2476_s25 + $0xa0] sm:$0xff] }
  0x53   : > { %v958_v51 = vpack.c.bf16 %v926_v39, %v894_v38  ;;  %v898_v22 = vld [vmem:[%s2476_s25 + $0xb8] sm:$0xff]  ;;  %v961_v37 = vpack.c.bf16 %v929_v14, %v897_v13 }
  0x54   : > { %v930_v23 = vld [vmem:[%s2476_s25 + $0x1b8] sm:$0xff] }
  0x55   : > { %v902_v13 = vld [vmem:[%s2476_s25 + $0xd8] sm:$0xff] }
  0x56   : > { %v934_v14 = vld [vmem:[%s2476_s25 + $0x1d8] sm:$0xff] }
  0x58   : > { %2008 = vmatmul.msk.bf16.vlgmr.msra.gmra.mxu0 %vm421_vm0, %v2498_v11  ;;  %2009 = vmatmul.msk.bf16.vlgmr.msra.gmra.mxu1 %vm421_vm0, %v2498_v11 }
  0x59   : > { %2010 = vmatmul.msk.bf16.vlgmr.msra.gmra.mxu2 %vm421_vm0, %v2498_v11  ;;  %656 = vmatpush.bf16.msra.mxu0 %v400_v58  ;;  %v2636_v58 = vld [vmem:[#allocation7] sm:$0xff] }
  0x5a   : > { %2011 = vmatmul.msk.bf16.vlgmr.msra.gmra.mxu3 %vm421_vm0, %v2498_v11  ;;  %684 = vmatpush.bf16.msra.mxu2 %v402_v57  ;;  %v944_v57 = vpack.c.bf16 %v912_v53, %v880_v52 }
  0x5b   : > { %698 = vmatpush.bf16.msra.mxu3 %v403_v59  ;;  %670 = vmatpush.bf16.msra.mxu1 %v401_v60  ;;  %v885_v59 = vld [vmem:[%s2476_s25 + $0x50] sm:$0xff] }
  0x5c   : > { %v917_v60 = vld [vmem:[%s2476_s25 + $0x150] sm:$0xff] }
  0x68   : > { %2012 = vmatmul.msk.bf16.vlgmr.msrb.gmra.mxu0 %vm421_vm0, %v2498_v11  ;;  %2013 = vmatmul.msk.bf16.vlgmr.msrb.gmra.mxu1 %vm421_vm0, %v2498_v11 }
  0x69   : > { %2014 = vmatmul.msk.bf16.vlgmr.msrb.gmra.mxu2 %vm421_vm0, %v2498_v11  ;;  %712 = vmatpush.bf16.msrb.mxu0 %v404_v6  ;;  %v950_v6 = vpack.c.bf16 %v918_v0, %v886_v63 }
  0x6a   : > { %2015 = vmatmul.msk.bf16.vlgmr.msrb.gmra.mxu3 %vm421_vm0, %v2498_v11  ;;  %740 = vmatpush.bf16.msrb.mxu2 %v406_v5  ;;  %v949_v5 = vpack.c.bf16 %v917_v60, %v885_v59 }
  0x6b   : > { %754 = vmatpush.bf16.msrb.mxu3 %v407_v7  ;;  %726 = vmatpush.bf16.msrb.mxu1 %v405_v8  ;;  %v948_v7 = vpack.c.bf16 %v916_v3, %v884_v2 }
  0x78   : > { %2016 = vmatmul.msk.bf16.vlgmr.msra.gmra.mxu0 %vm421_vm0, %v2498_v11  ;;  %2017 = vmatmul.msk.bf16.vlgmr.msra.gmra.mxu1 %vm421_vm0, %v2498_v11 }
  0x79   : > { %2018 = vmatmul.msk.bf16.vlgmr.msra.gmra.mxu2 %vm421_vm0, %v2498_v11  ;;  %768 = vmatpush.bf16.msra.mxu0 %v408_v19  ;;  %v922_v19 = vld [vmem:[%s2476_s25 + $0x178] sm:$0xff] }
  0x7a   : > { %2019 = vmatmul.msk.bf16.vlgmr.msra.gmra.mxu3 %vm421_vm0, %v2498_v11  ;;  %796 = vmatpush.bf16.msra.mxu2 %v410_v18  ;;  %v890_v18 = vld [vmem:[%s2476_s25 + $0x78] sm:$0xff] }
  0x7b   : > { %810 = vmatpush.bf16.msra.mxu3 %v411_v20  ;;  %782 = vmatpush.bf16.msra.mxu1 %v409_v21  ;;  %v954_v27 = vpack.c.bf16 %v922_v19, %v890_v18 }
  0x88   : > { %2020 = vmatmul.msk.bf16.vlgmr.msrb.gmra.mxu0 %vm421_vm0, %v2498_v11  ;;  %2021 = vmatmul.msk.bf16.vlgmr.msrb.gmra.mxu1 %vm421_vm0, %v2498_v11 }
  0x89   : > { %2022 = vmatmul.msk.bf16.vlgmr.msrb.gmra.mxu2 %vm421_vm0, %v2498_v11  ;;  %824 = vmatpush.bf16.msrb.mxu0 %v412_v31 }
  0x8a   : > { %2023 = vmatmul.msk.bf16.vlgmr.msrb.gmra.mxu3 %vm421_vm0, %v2498_v11  ;;  %852 = vmatpush.bf16.msrb.mxu2 %v414_v30 }
  0x8b   : > { %866 = vmatpush.bf16.msrb.mxu3 %v415_v32  ;;  %838 = vmatpush.bf16.msrb.mxu1 %v413_v33  ;;  %v893_v33 = vld [vmem:[%s2476_s25 + $0x90] sm:$0xff] }
  0x8c   : > { %v957_v47 = vpack.c.bf16 %v925_v34, %v893_v33  ;;  %v928_v33 = vld [vmem:[%s2476_s25 + $0x1a8] sm:$0xff] }
  0x98   : > { %2024 = vmatmul.msk.bf16.vlgmr.msra.gmra.mxu0 %vm421_vm0, %v2498_v11  ;;  %2025 = vmatmul.msk.bf16.vlgmr.msra.gmra.mxu1 %vm421_vm0, %v2498_v11 }
  0x99   : > { %2026 = vmatmul.msk.bf16.vlgmr.msra.gmra.mxu2 %vm421_vm0, %v2498_v11  ;;  %986 = vmatpush.bf16.msra.mxu0 %v939_v43 }
  0x9a   : > { %2027 = vmatmul.msk.bf16.vlgmr.msra.gmra.mxu3 %vm421_vm0, %v2498_v11  ;;  %1014 = vmatpush.bf16.msra.mxu2 %v941_v42 }
  0x9b   : > { %1028 = vmatpush.bf16.msra.mxu3 %v942_v44  ;;  %1000 = vmatpush.bf16.msra.mxu1 %v940_v45  ;;  %v892_v44 = vld [vmem:[%s2476_s25 + $0x88] sm:$0xff] }
  0x9c   : > { %v924_v45 = vld [vmem:[%s2476_s25 + $0x188] sm:$0xff] }
  0x9d   : > { %v956_v52 = vpack.c.bf16 %v924_v45, %v892_v44 }
  0xa8   : > { %2028 = vmatmul.msk.bf16.vlgmr.msrb.gmra.mxu0 %vm421_vm0, %v2498_v11  ;;  %2029 = vmatmul.msk.bf16.vlgmr.msrb.gmra.mxu1 %vm421_vm0, %v2498_v11 }
  0xa9   : > { %2030 = vmatmul.msk.bf16.vlgmr.msrb.gmra.mxu2 %vm421_vm0, %v2498_v11  ;;  %1042 = vmatpush.bf16.msrb.mxu0 %v943_v55 }
  0xaa   : > { %2031 = vmatmul.msk.bf16.vlgmr.msrb.gmra.mxu3 %vm421_vm0, %v2498_v11  ;;  %1070 = vmatpush.bf16.msrb.mxu2 %v945_v54  ;;  %v947_v11 = vpack.c.bf16 %v915_v62, %v883_v61 }
  0xab   : > { %1084 = vmatpush.bf16.msrb.mxu3 %v946_v56  ;;  %1056 = vmatpush.bf16.msrb.mxu1 %v944_v57 }
  0xb5   : > { %v2644_v1 = vpop.f32.mrf.mxu0  ;;  %v448_v4 = vpop.f32.mrf.mxu1 }
  0xb6   : > { %v1509_v40 = vmul.f32 %v2644_v1, %v2644_v1  ;;  %v1510_v41 = vmul.f32 %v448_v4, %v448_v4  ;;  %v1436_v48 = vadd.f32 %v448_v4, %v2644_v1 }
  0xb8   : > { %2036 = vmatmul.msk.bf16.vlgmr.msra.gmra.mxu0 %vm421_vm0, %v2636_v58  ;;  %2037 = vmatmul.msk.bf16.vlgmr.msra.gmra.mxu1 %vm421_vm0, %v2636_v58  ;;  %v1573_v53 = vadd.f32 %v1510_v41, %v1509_v40  ;;  %v962_v41 = vpack.c.bf16 %v930_v23, %v898_v22 }
  0xb9   : > { %2038 = vmatmul.msk.bf16.vlgmr.msra.gmra.mxu2 %vm421_vm0, %v2636_v58  ;;  %1098 = vmatpush.bf16.msra.mxu0 %v947_v11 }
  0xba   : > { %2039 = vmatmul.msk.bf16.vlgmr.msra.gmra.mxu3 %vm421_vm0, %v2636_v58  ;;  %1126 = vmatpush.bf16.msra.mxu2 %v949_v5 }
  0xbb   : > { %1140 = vmatpush.bf16.msra.mxu3 %v950_v6  ;;  %1112 = vmatpush.bf16.msra.mxu1 %v948_v7 }
  0xbc   : > { %v462_v8 = vpop.f32.mrf.mxu2 }
  0xbd   : > { %v2656_v9 = vpop.f32.mrf.mxu3  ;;  %v2658_v10 = vpop.f32.mrf.mxu0  ;;  %v1511_v49 = vmul.f32 %v462_v8, %v462_v8  ;;  %v1437_v54 = vadd.f32 %v1436_v48, %v462_v8 }
  0xbe   : > { %v2660_v12 = vpop.f32.mrf.mxu1  ;;  %v1512_v56 = vmul.f32 %v2656_v9, %v2656_v9  ;;  %v1541_v57 = vmul.f32 %v2658_v10, %v2658_v10 }
  0xbf   : > { %v1574_v55 = vadd.f32 %v1573_v53, %v1511_v49  ;;  %v1542_v59 = vmul.f32 %v2660_v12, %v2660_v12  ;;  %v1438_v61 = vadd.f32 %v1437_v54, %v2656_v9  ;;  %v1469_v1 = vadd.f32 %v2660_v12, %v2658_v10 }
  0xc1   : > { %v1575_v4 = vadd.f32 %v1574_v55, %v1512_v56  ;;  %v1606_v11 = vadd.f32 %v1542_v59, %v1541_v57 }
  0xc4   : > { %v2665_v16 = vpop.f32.mrf.mxu2 }
  0xc5   : > { %v2670_v20 = vpop.f32.mrf.mxu3  ;;  %v2672_v21 = vpop.f32.mrf.mxu0  ;;  %v1543_v2 = vmul.f32 %v2665_v16, %v2665_v16  ;;  %v1470_v6 = vadd.f32 %v1469_v1, %v2665_v16 }
  0xc6   : > { %v2676_v24 = vpop.f32.mrf.mxu1  ;;  %v1513_v62 = vmul.f32 %v2672_v21, %v2672_v21  ;;  %v1439_v5 = vadd.f32 %v1438_v61, %v2672_v21  ;;  %v1544_v16 = vmul.f32 %v2670_v20, %v2670_v20  ;;  %v927_v21 = vld [vmem:[%s2476_s25 + $0x1a0] sm:$0xff] }
  0xc7   : > { %v1514_v8 = vmul.f32 %v2676_v24, %v2676_v24  ;;  %v1607_v9 = vadd.f32 %v1606_v11, %v1543_v2  ;;  %v1471_v17 = vadd.f32 %v1470_v6, %v2670_v20  ;;  %v959_v40 = vpack.c.bf16 %v927_v21, %v895_v15 }
  0xc8   : > { %2040 = vmatmul.msk.bf16.vlgmr.msrb.gmra.mxu0 %vm421_vm0, %v2636_v58  ;;  %2041 = vmatmul.msk.bf16.vlgmr.msrb.gmra.mxu1 %vm421_vm0, %v2636_v58  ;;  %v1576_v7 = vadd.f32 %v1575_v4, %v1513_v62  ;;  %v1440_v10 = vadd.f32 %v1439_v5, %v2676_v24 }
  0xc9   : > { %2042 = vmatmul.msk.bf16.vlgmr.msrb.gmra.mxu2 %vm421_vm0, %v2636_v58  ;;  %1154 = vmatpush.bf16.msrb.mxu0 %v951_v26  ;;  %v1608_v34 = vadd.f32 %v1607_v9, %v1544_v16  ;;  %v899_v9 = vld [vmem:[%s2476_s25 + $0xc0] sm:$0xff]  ;;  %v900_v16 = vld [vmem:[%s2476_s25 + $0xc8] sm:$0xff] }
  0xca   : > { %2043 = vmatmul.msk.bf16.vlgmr.msrb.gmra.mxu3 %vm421_vm0, %v2636_v58  ;;  %1182 = vmatpush.bf16.msrb.mxu2 %v953_v25  ;;  %v1577_v24 = vadd.f32 %v1576_v7, %v1514_v8  ;;  %v901_v7 = vld [vmem:[%s2476_s25 + $0xd0] sm:$0xff] }
  0xcb   : > { %1196 = vmatpush.bf16.msrb.mxu3 %v954_v27  ;;  %1168 = vmatpush.bf16.msrb.mxu1 %v952_v28  ;;  %v896_v28 = vld [vmem:[%s2476_s25 + $0xa8] sm:$0xff]  ;;  %v933_v8 = vld [vmem:[%s2476_s25 + $0x1d0] sm:$0xff] }
  0xcc   : > { %v2686_v29 = vpop.f32.mrf.mxu2 }
  0xcd   : > { %v2688_v30 = vpop.f32.mrf.mxu3  ;;  %v2690_v31 = vpop.f32.mrf.mxu0  ;;  %v1515_v12 = vmul.f32 %v2686_v29, %v2686_v29  ;;  %v1441_v25 = vadd.f32 %v1440_v10, %v2686_v29  ;;  %v960_v29 = vpack.c.bf16 %v928_v33, %v896_v28 }
  0xce   : > { %v2692_v32 = vpop.f32.mrf.mxu1  ;;  %v1545_v18 = vmul.f32 %v2690_v31, %v2690_v31  ;;  %v1472_v20 = vadd.f32 %v1471_v17, %v2690_v31  ;;  %v1516_v39 = vmul.f32 %v2688_v30, %v2688_v30 }
  0xcf   : > { %v1578_v38 = vadd.f32 %v1577_v24, %v1515_v12  ;;  %v1442_v45 = vadd.f32 %v1441_v25, %v2688_v30  ;;  %v1546_v48 = vmul.f32 %v2692_v32, %v2692_v32  ;;  %v931_v12 = vld [vmem:[%s2476_s25 + $0x1c0] sm:$0xff]  ;;  %v965_v25 = vpack.c.bf16 %v933_v8, %v901_v7 }
  0xd0   : > { %v1609_v44 = vadd.f32 %v1608_v34, %v1545_v18  ;;  %v1473_v31 = vadd.f32 %v1472_v20, %v2692_v32  ;;  %v932_v18 = vld [vmem:[%s2476_s25 + $0x1c8] sm:$0xff]  ;;  %v963_v33 = vpack.c.bf16 %v931_v12, %v899_v9  ;;  %v966_v34 = vpack.c.bf16 %v934_v14, %v902_v13 }
  0xd1   : > { %v1579_v30 = vadd.f32 %v1578_v38, %v1516_v39  ;;  %v936_v12 = vld [vmem:[%s2476_s25 + $0x1e8] sm:$0xff] }
  0xd4   : > { %v2697_v36 = vpop.f32.mrf.mxu2 }
  0xd5   : > { %v2704_v42 = vpop.f32.mrf.mxu3  ;;  %v2706_v43 = vpop.f32.mrf.mxu0  ;;  %v1547_v49 = vmul.f32 %v2697_v36, %v2697_v36 }
  0xd6   : > { %v2710_v46 = vpop.f32.mrf.mxu1  ;;  %v1548_v62 = vmul.f32 %v2704_v42, %v2704_v42 }
  0xd7   : > { %v1518_v32 = vmul.f32 %v2710_v46, %v2710_v46 }
  0xd8   : > { %2044 = vmatmul.msk.bf16.vlgmr.msra.gmra.mxu0 %vm421_vm0, %v2636_v58  ;;  %2045 = vmatmul.msk.bf16.vlgmr.msra.gmra.mxu1 %vm421_vm0, %v2636_v58 }
  0xd9   : > { %2046 = vmatmul.msk.bf16.vlgmr.msra.gmra.mxu2 %vm421_vm0, %v2636_v58  ;;  %1210 = vmatpush.bf16.msra.mxu0 %v955_v50  ;;  %v1443_v50 = vadd.f32 %v1442_v45, %v2706_v43 }
  0xda   : > { %2047 = vmatmul.msk.bf16.vlgmr.msra.gmra.mxu3 %vm421_vm0, %v2636_v58  ;;  %1238 = vmatpush.bf16.msra.mxu2 %v957_v47  ;;  %v1517_v47 = vmul.f32 %v2706_v43, %v2706_v43 }
  0xdb   : > { %1252 = vmatpush.bf16.msra.mxu3 %v958_v51  ;;  %1224 = vmatpush.bf16.msra.mxu1 %v956_v52  ;;  %v1610_v51 = vadd.f32 %v1609_v44, %v1546_v48  ;;  %v1474_v52 = vadd.f32 %v1473_v31, %v2697_v36  ;;  %v1444_v59 = vadd.f32 %v1443_v50, %v2710_v46 }
  0xdc   : > { %v2727_v60 = vpop.f32.mrf.mxu2  ;;  %v1580_v54 = vadd.f32 %v1579_v30, %v1517_v47 }
  0xdd   : > { %v2732_v63 = vpop.f32.mrf.mxu3  ;;  %v2734_v0 = vpop.f32.mrf.mxu0  ;;  %v1611_v43 = vadd.f32 %v1610_v51, %v1547_v49  ;;  %v1519_v36 = vmul.f32 %v2727_v60, %v2727_v60  ;;  %v1475_v61 = vadd.f32 %v1474_v52, %v2704_v42  ;;  %v1445_v4 = vadd.f32 %v1444_v59, %v2727_v60 }
  0xde   : > { %v2740_v3 = vpop.f32.mrf.mxu1  ;;  %v1549_v1 = vmul.f32 %v2734_v0, %v2734_v0  ;;  %v1581_v2 = vadd.f32 %v1580_v54, %v1518_v32  ;;  %v1520_v6 = vmul.f32 %v2732_v63, %v2732_v63 }
  0xdf   : > { %v1612_v5 = vadd.f32 %v1611_v43, %v1548_v62  ;;  %v1476_v46 = vadd.f32 %v1475_v61, %v2734_v0  ;;  %v1446_v60 = vadd.f32 %v1445_v4, %v2732_v63  ;;  %v1550_v22 = vmul.f32 %v2740_v3, %v2740_v3  ;;  %v905_v62 = vld [vmem:[%s2476_s25 + $0xf0] sm:$0xff] }
  0xe0   : > { %v1582_v11 = vadd.f32 %v1581_v2, %v1519_v36 }
  0xe1   : > { %v1613_v10 = vadd.f32 %v1612_v5, %v1549_v1  ;;  %v1477_v21 = vadd.f32 %v1476_v46, %v2740_v3  ;;  %v937_v1 = vld [vmem:[%s2476_s25 + $0x1f0] sm:$0xff]  ;;  %v935_v5 = vld [vmem:[%s2476_s25 + $0x1e0] sm:$0xff]  ;;  %v938_v46 = vld [vmem:[%s2476_s25 + $0x1f8] sm:$0xff] }
  0xe2   : > { %v1583_v28 = vadd.f32 %v1582_v11, %v1520_v6  ;;  %v969_v14 = vpack.c.bf16 %v937_v1, %v905_v62 }
  0xe3   : > { %v1614_v20 = vadd.f32 %v1613_v10, %v1550_v22  ;;  %v904_v10 = vld [vmem:[%s2476_s25 + $0xe8] sm:$0xff] }
  0xe4   : > { %v2757_v19 = vpop.f32.mrf.mxu2 }
  0xe5   : > { %v2763_v26 = vpop.f32.mrf.mxu3  ;;  %v2765_v27 = vpop.f32.mrf.mxu0  ;;  %v1551_v23 = vmul.f32 %v2757_v19, %v2757_v19  ;;  %v1478_v38 = vadd.f32 %v1477_v21, %v2757_v19 }
  0xe6   : > { %v2770_v35 = vpop.f32.mrf.mxu1  ;;  %v1521_v15 = vmul.f32 %v2765_v27, %v2765_v27  ;;  %v1447_v63 = vadd.f32 %v1446_v60, %v2765_v27 }
  0xe7   : > { %v1522_v3 = vmul.f32 %v2770_v35, %v2770_v35  ;;  %v1615_v27 = vadd.f32 %v1614_v20, %v1551_v23  ;;  %v1479_v45 = vadd.f32 %v1478_v38, %v2763_v26 }
  0xe8   : > { %2048 = vmatmul.msk.bf16.vlgmr.msrb.gmra.mxu0 %vm421_vm0, %v2636_v58  ;;  %2049 = vmatmul.msk.bf16.vlgmr.msrb.gmra.mxu1 %vm421_vm0, %v2636_v58  ;;  %v1584_v39 = vadd.f32 %v1583_v28, %v1521_v15 }
  0xe9   : > { %2050 = vmatmul.msk.bf16.vlgmr.msrb.gmra.mxu2 %vm421_vm0, %v2636_v58  ;;  %1266 = vmatpush.bf16.msrb.mxu0 %v959_v40  ;;  %v1448_v40 = vadd.f32 %v1447_v63, %v2770_v35 }
  0xea   : > { %2051 = vmatmul.msk.bf16.vlgmr.msrb.gmra.mxu3 %vm421_vm0, %v2636_v58  ;;  %1294 = vmatpush.bf16.msrb.mxu2 %v961_v37  ;;  %v964_v37 = vpack.c.bf16 %v932_v18, %v900_v16  ;;  %v1585_v47 = vadd.f32 %v1584_v39, %v1522_v3 }
  0xeb   : > { %1308 = vmatpush.bf16.msrb.mxu3 %v962_v41  ;;  %1280 = vmatpush.bf16.msrb.mxu1 %v960_v29  ;;  %v1552_v41 = vmul.f32 %v2763_v26, %v2763_v26 }
  0xec   : > { %v2792_v53 = vpop.f32.mrf.mxu2 }
  0xed   : > { %v2796_v55 = vpop.f32.mrf.mxu3  ;;  %v2798_v56 = vpop.f32.mrf.mxu0  ;;  %v1523_v19 = vmul.f32 %v2792_v53, %v2792_v53  ;;  %v1449_v31 = vadd.f32 %v1448_v40, %v2792_v53  ;;  %v1616_v49 = vadd.f32 %v1615_v27, %v1552_v41 }
  0xee   : > { %v2800_v57 = vpop.f32.mrf.mxu1  ;;  %v1553_v44 = vmul.f32 %v2798_v56, %v2798_v56  ;;  %v1524_v51 = vmul.f32 %v2796_v55, %v2796_v55  ;;  %v1480_v52 = vadd.f32 %v1479_v45, %v2798_v56  ;;  %v903_v56 = vld [vmem:[%s2476_s25 + $0xe0] sm:$0xff] }
  0xef   : > { %v1586_v50 = vadd.f32 %v1585_v47, %v1523_v19  ;;  %v1450_v54 = vadd.f32 %v1449_v31, %v2796_v55  ;;  %v1554_v32 = vmul.f32 %v2800_v57, %v2800_v57  ;;  %v906_v55 = vld [vmem:[%s2476_s25 + $0xf8] sm:$0xff] }
  0xf0   : > { %v1617_v26 = vadd.f32 %v1616_v49, %v1553_v44  ;;  %v1481_v36 = vadd.f32 %v1480_v52, %v2800_v57  ;;  %v970_v16 = vpack.c.bf16 %v938_v46, %v906_v55 }
  0xf1   : > { %v1587_v59 = vadd.f32 %v1586_v50, %v1524_v51 }
  0xf2   : > { %v1618_v2 = vadd.f32 %v1617_v26, %v1554_v32 }
  0xf4   : > { %v2817_v42 = vpop.f32.mrf.mxu2 }
  0xf5   : > { %v2825_v0 = vpop.f32.mrf.mxu3  ;;  %v658_v17 = vpop.f32.mrf.mxu0  ;;  %v1555_v43 = vmul.f32 %v2817_v42, %v2817_v42  ;;  %v1482_v11 = vadd.f32 %v1481_v36, %v2817_v42  ;;  %v968_v42 = vpack.c.bf16 %v936_v12, %v904_v10 }
  0xf6   : > { %v672_v24 = vpop.f32.mrf.mxu1  ;;  %v1525_v53 = vmul.f32 %v658_v17, %v658_v17  ;;  %v1451_v61 = vadd.f32 %v1450_v54, %v658_v17  ;;  %v967_v17 = vpack.c.bf16 %v935_v5, %v903_v56  ;;  %v1556_v18 = vmul.f32 %v2825_v0, %v2825_v0 }
  0xf7   : > { %v1526_v7 = vmul.f32 %v672_v24, %v672_v24  ;;  %v1619_v13 = vadd.f32 %v1618_v2, %v1555_v43  ;;  %v1483_v22 = vadd.f32 %v1482_v11, %v2825_v0 }
  0xf8   : > { %2052 = vmatmul.msk.bf16.vlgmr.msra.gmra.mxu0 %vm421_vm0, %v2636_v58  ;;  %2053 = vmatmul.msk.bf16.vlgmr.msra.gmra.mxu1 %vm421_vm0, %v2636_v58  ;;  %v1588_v6 = vadd.f32 %v1587_v59, %v1525_v53  ;;  %v1452_v60 = vadd.f32 %v1451_v61, %v672_v24 }
  0xf9   : > { %2054 = vmatmul.msk.bf16.vlgmr.msra.gmra.mxu2 %vm421_vm0, %v2636_v58  ;;  %1322 = vmatpush.bf16.msra.mxu0 %v963_v33  ;;  %v1620_v24 = vadd.f32 %v1619_v13, %v1556_v18 }
  0xfa   : > { %2055 = vmatmul.msk.bf16.vlgmr.msra.gmra.mxu3 %vm421_vm0, %v2636_v58  ;;  %1350 = vmatpush.bf16.msra.mxu2 %v965_v25  ;;  %v1589_v23 = vadd.f32 %v1588_v6, %v1526_v7 }
  0xfb   : > { %1364 = vmatpush.bf16.msra.mxu3 %v966_v34  ;;  %1336 = vmatpush.bf16.msra.mxu1 %v964_v37 }
  0xfc   : > { %v686_v29 = vpop.f32.mrf.mxu2 }
  0xfd   : > { %v700_v35 = vpop.f32.mrf.mxu3  ;;  %v660_v48 = vpop.f32.mrf.mxu0  ;;  %v1527_v15 = vmul.f32 %v686_v29, %v686_v29  ;;  %v1453_v25 = vadd.f32 %v1452_v60, %v686_v29 }
  0xfe   : > { %v674_v30 = vpop.f32.mrf.mxu1  ;;  %v1557_v21 = vmul.f32 %v660_v48, %v660_v48  ;;  %v1528_v63 = vmul.f32 %v700_v35, %v700_v35  ;;  %v1484_v33 = vadd.f32 %v1483_v22, %v660_v48 }
  0xff   : > { %v1590_v28 = vadd.f32 %v1589_v23, %v1527_v15  ;;  %v1454_v20 = vadd.f32 %v1453_v25, %v700_v35  ;;  %v1558_v3 = vmul.f32 %v674_v30, %v674_v30 }
 0x100   : > { %v1621_v34 = vadd.f32 %v1620_v24, %v1557_v21  ;;  %v1485_v41 = vadd.f32 %v1484_v33, %v674_v30 }
 0x101   : > { %v1591_v19 = vadd.f32 %v1590_v28, %v1528_v63 }
 0x102   : > { %v1622_v29 = vadd.f32 %v1621_v34, %v1558_v3 }
 0x104   : > { %v688_v4 = vpop.f32.mrf.mxu2 }
 0x105   : > { %v702_v8 = vpop.f32.mrf.mxu3  ;;  %v714_v9 = vpop.f32.mrf.mxu0  ;;  %v1559_v27 = vmul.f32 %v688_v4, %v688_v4  ;;  %v1486_v45 = vadd.f32 %v1485_v41, %v688_v4 }
 0x106   : > { %v728_v57 = vpop.f32.mrf.mxu1  ;;  %v1529_v37 = vmul.f32 %v714_v9, %v714_v9  ;;  %v1455_v44 = vadd.f32 %v1454_v20, %v714_v9  ;;  %v1560_v51 = vmul.f32 %v702_v8, %v702_v8 }
 0x107   : > { %v1530_v31 = vmul.f32 %v728_v57, %v728_v57  ;;  %v1623_v48 = vadd.f32 %v1622_v29, %v1559_v27  ;;  %v1487_v35 = vadd.f32 %v1486_v45, %v702_v8 }
 0x108   : > { %2056 = vmatmul.msk.bf16.vlgmr.msrb.gmra.mxu0 %vm421_vm0, %v2636_v58  ;;  %2057 = vmatmul.msk.bf16.vlgmr.msrb.gmra.mxu1 %vm421_vm0, %v2636_v58  ;;  %v1592_v47 = vadd.f32 %v1591_v19, %v1529_v37  ;;  %v1456_v49 = vadd.f32 %v1455_v44, %v728_v57 }
 0x109   : > { %2058 = vmatmul.msk.bf16.vlgmr.msrb.gmra.mxu2 %vm421_vm0, %v2636_v58  ;;  %1378 = vmatpush.bf16.msrb.mxu0 %v967_v17  ;;  %v1624_v59 = vadd.f32 %v1623_v48, %v1560_v51 }
 0x10a   : > { %2059 = vmatmul.msk.bf16.vlgmr.msrb.gmra.mxu3 %vm421_vm0, %v2636_v58  ;;  %1406 = vmatpush.bf16.msrb.mxu2 %v969_v14  ;;  %v1593_v54 = vadd.f32 %v1592_v47, %v1530_v31 }
 0x10b   : > { %1420 = vmatpush.bf16.msrb.mxu3 %v970_v16  ;;  %1392 = vmatpush.bf16.msrb.mxu1 %v968_v42 }
 0x10c   : > { %v742_v0 = vpop.f32.mrf.mxu2 }
 0x10d   : > { %v756_v38 = vpop.f32.mrf.mxu3  ;;  %v716_v39 = vpop.f32.mrf.mxu0  ;;  %v1531_v50 = vmul.f32 %v742_v0, %v742_v0  ;;  %v1457_v53 = vadd.f32 %v1456_v49, %v742_v0 }
 0x10e   : > { %v730_v40 = vpop.f32.mrf.mxu1  ;;  %v1561_v52 = vmul.f32 %v716_v39, %v716_v39  ;;  %v1532_v30 = vmul.f32 %v756_v38, %v756_v38  ;;  %v1488_v62 = vadd.f32 %v1487_v35, %v716_v39 }
 0x10f   : > { %v1594_v61 = vadd.f32 %v1593_v54, %v1531_v50  ;;  %v1458_v56 = vadd.f32 %v1457_v53, %v756_v38  ;;  %v1562_v4 = vmul.f32 %v730_v40, %v730_v40 }
 0x110   : > { %v1625_v1 = vadd.f32 %v1624_v59, %v1561_v52  ;;  %v1489_v46 = vadd.f32 %v1488_v62, %v730_v40 }
 0x111   : > { %v1595_v55 = vadd.f32 %v1594_v61, %v1532_v30 }
 0x112   : > { %v1626_v6 = vadd.f32 %v1625_v1, %v1562_v4 }
 0x114   : > { %v744_v26 = vpop.f32.mrf.mxu2 }
 0x115   : > { %v758_v32 = vpop.f32.mrf.mxu3  ;;  %v770_v43 = vpop.f32.mrf.mxu0  ;;  %v1563_v5 = vmul.f32 %v744_v26, %v744_v26  ;;  %v1490_v8 = vadd.f32 %v1489_v46, %v744_v26 }
 0x116   : > { %v784_v36 = vpop.f32.mrf.mxu1  ;;  %v1533_v2 = vmul.f32 %v770_v43, %v770_v43  ;;  %v1459_v11 = vadd.f32 %v1458_v56, %v770_v43  ;;  %v1564_v17 = vmul.f32 %v758_v32, %v758_v32 }
 0x117   : > { %v1534_v10 = vmul.f32 %v784_v36, %v784_v36  ;;  %v1627_v57 = vadd.f32 %v1626_v6, %v1563_v5  ;;  %v1491_v18 = vadd.f32 %v1490_v8, %v758_v32 }
 0x118   : > { %2060 = vmatmul.msk.bf16.vlgmr.msra.gmra.mxu0 %vm421_vm0, %v2636_v58  ;;  %2061 = vmatmul.msk.bf16.vlgmr.msra.gmra.mxu1 %vm421_vm0, %v2636_v58  ;;  %v1596_v9 = vadd.f32 %v1595_v55, %v1533_v2  ;;  %v1460_v60 = vadd.f32 %v1459_v11, %v784_v36 }
 0x119   : > { %2062 = vmatmul.msk.bf16.vlgmr.msra.gmra.mxu2 %vm421_vm0, %v2636_v58  ;;  %v1628_v22 = vadd.f32 %v1627_v57, %v1564_v17 }
 0x11a   : > { %2063 = vmatmul.msk.bf16.vlgmr.msra.gmra.mxu3 %vm421_vm0, %v2636_v58  ;;  %v1597_v21 = vadd.f32 %v1596_v9, %v1534_v10 }
 0x11c   : > { %v798_v7 = vpop.f32.mrf.mxu2 }
 0x11d   : > { %v812_v12 = vpop.f32.mrf.mxu3  ;;  %v772_v13 = vpop.f32.mrf.mxu0  ;;  %v1535_v15 = vmul.f32 %v798_v7, %v798_v7  ;;  %v1461_v42 = vadd.f32 %v1460_v60, %v798_v7 }
 0x11e   : > { %v786_v14 = vpop.f32.mrf.mxu1  ;;  %v1565_v16 = vmul.f32 %v772_v13, %v772_v13  ;;  %v1536_v25 = vmul.f32 %v812_v12, %v812_v12  ;;  %v1492_v24 = vadd.f32 %v1491_v18, %v772_v13 }
 0x11f   : > { %v1598_v23 = vadd.f32 %v1597_v21, %v1535_v15  ;;  %v1462_v33 = vadd.f32 %v1461_v42, %v812_v12  ;;  %v1566_v20 = vmul.f32 %v786_v14, %v786_v14 }
 0x120   : > { %v1629_v28 = vadd.f32 %v1628_v22, %v1565_v16  ;;  %v1493_v3 = vadd.f32 %v1492_v24, %v786_v14 }
 0x121   : > { %v1599_v39 = vadd.f32 %v1598_v23, %v1536_v25 }
 0x122   : > { %v1630_v19 = vadd.f32 %v1629_v28, %v1566_v20 }
 0x124   : > { %v800_v63 = vpop.f32.mrf.mxu2 }
 0x125   : > { %v814_v34 = vpop.f32.mrf.mxu3  ;;  %v826_v0 = vpop.f32.mrf.mxu0  ;;  %v1567_v27 = vmul.f32 %v800_v63, %v800_v63  ;;  %v1494_v41 = vadd.f32 %v1493_v3, %v800_v63 }
 0x126   : > { %v1537_v37 = vmul.f32 %v826_v0, %v826_v0  ;;  %v840_v38 = vpop.f32.mrf.mxu1  ;;  %v1463_v40 = vadd.f32 %v1462_v33, %v826_v0  ;;  %v1568_v31 = vmul.f32 %v814_v34, %v814_v34 }
 0x127   : > { %v1538_v29 = vmul.f32 %v840_v38, %v840_v38  ;;  %v1631_v45 = vadd.f32 %v1630_v19, %v1567_v27  ;;  %v1495_v49 = vadd.f32 %v1494_v41, %v814_v34 }
 0x128   : > { %2064 = vmatmul.msk.bf16.vlgmr.msrb.gmra.mxu0 %vm421_vm0, %v2636_v58  ;;  %v1600_v44 = vadd.f32 %v1599_v39, %v1537_v37  ;;  %2065 = vmatmul.msk.bf16.vlgmr.msrb.gmra.mxu1 %vm421_vm0, %v2636_v58  ;;  %v1464_v47 = vadd.f32 %v1463_v40, %v840_v38 }
 0x129   : > { %2066 = vmatmul.msk.bf16.vlgmr.msrb.gmra.mxu2 %vm421_vm0, %v2636_v58  ;;  %v1632_v43 = vadd.f32 %v1631_v45, %v1568_v31 }
 0x12a   : > { %2067 = vmatmul.msk.bf16.vlgmr.msrb.gmra.mxu3 %vm421_vm0, %v2636_v58  ;;  %v1601_v50 = vadd.f32 %v1600_v44, %v1538_v29 }
 0x12c   : > { %v854_v48 = vpop.f32.mrf.mxu2 }
 0x12d   : > { %v1465_v51 = vadd.f32 %v1464_v47, %v854_v48  ;;  %v1539_v52 = vmul.f32 %v854_v48, %v854_v48  ;;  %v868_v26 = vpop.f32.mrf.mxu3  ;;  %v828_v35 = vpop.f32.mrf.mxu0 }
 0x12e   : > { %v1540_v54 = vmul.f32 %v868_v26, %v868_v26  ;;  %v1569_v53 = vmul.f32 %v828_v35, %v828_v35  ;;  %v842_v32 = vpop.f32.mrf.mxu1  ;;  %v1496_v59 = vadd.f32 %v1495_v49, %v828_v35 }
 0x12f   : > { %v1466_v36 = vadd.f32 %v1465_v51, %v868_v26  ;;  %v1602_v61 = vadd.f32 %v1601_v50, %v1539_v52  ;;  %v1570_v1 = vmul.f32 %v842_v32, %v842_v32 }
 0x130   : > { %v1633_v30 = vadd.f32 %v1632_v43, %v1569_v53  ;;  %v1497_v62 = vadd.f32 %v1496_v59, %v842_v32 }
 0x131   : > { %1467 = vadd.xlane.f32.xlu0 %v1466_v36  ;;  %v1603_v58 = vadd.f32 %v1602_v61, %v1540_v54 }
 0x132   : > { %v1634_v2 = vadd.f32 %v1633_v30, %v1570_v1 }
 0x133   : > { %1604 = vadd.xlane.f32.xlu1 %v1603_v58 }
 0x134   : > { %v856_v56 = vpop.f32.mrf.mxu2 }
 0x135   : > { %v1498_v4 = vadd.f32 %v1497_v62, %v856_v56  ;;  %v1571_v5 = vmul.f32 %v856_v56, %v856_v56  ;;  %v870_v55 = vpop.f32.mrf.mxu3  ;;  %v988_v46 = vpop.f32.mrf.mxu0 }
 0x136   : > { %v1002_v11 = vpop.f32.mrf.mxu1  ;;  %v1572_v6 = vmul.f32 %v870_v55, %v870_v55  ;;  %v1719_v23 = vmul.f32 %v988_v46, %v988_v46 }
 0x137   : > { %v1499_v7 = vadd.f32 %v1498_v4, %v870_v55  ;;  %v1635_v8 = vadd.f32 %v1634_v2, %v1571_v5  ;;  %v1720_v25 = vmul.f32 %v1002_v11, %v1002_v11  ;;  %v1646_v33 = vadd.f32 %v1002_v11, %v988_v46 }
 0x139   : > { %1500 = vadd.xlane.f32.xlu0 %v1499_v7  ;;  %v1636_v9 = vadd.f32 %v1635_v8, %v1572_v6  ;;  %v1783_v0 = vadd.f32 %v1720_v25, %v1719_v23 }
 0x13b   : > { %1637 = vadd.xlane.f32.xlu1 %v1636_v9 }
 0x13c   : > { %v1016_v10 = vpop.f32.mrf.mxu2 }
 0x13d   : > { %v1030_v12 = vpop.f32.mrf.mxu3  ;;  %v990_v13 = vpop.f32.mrf.mxu0  ;;  %v1721_v34 = vmul.f32 %v1016_v10, %v1016_v10  ;;  %v1647_v20 = vadd.f32 %v1646_v33, %v1016_v10 }
 0x13e   : > { %v1004_v57 = vpop.f32.mrf.mxu1  ;;  %v1722_v38 = vmul.f32 %v1030_v12, %v1030_v12  ;;  %v1751_v39 = vmul.f32 %v990_v13, %v990_v13 }
 0x13f   : > { %v1784_v37 = vadd.f32 %v1783_v0, %v1721_v34  ;;  %v1752_v3 = vmul.f32 %v1004_v57, %v1004_v57  ;;  %v1648_v40 = vadd.f32 %v1647_v20, %v1030_v12  ;;  %v1679_v29 = vadd.f32 %v1004_v57, %v990_v13 }
 0x141   : > { %v1785_v31 = vadd.f32 %v1784_v37, %v1722_v38  ;;  %v1816_v49 = vadd.f32 %v1752_v3, %v1751_v39 }
 0x144   : > { %v1018_v14 = vpop.f32.mrf.mxu2 }
 0x145   : > { %v1032_v60 = vpop.f32.mrf.mxu3  ;;  %v1044_v15 = vpop.f32.mrf.mxu0  ;;  %v1753_v45 = vmul.f32 %v1018_v14, %v1018_v14  ;;  %v1680_v50 = vadd.f32 %v1679_v29, %v1018_v14 }
 0x146   : > { %v1058_v17 = vpop.f32.mrf.mxu1  ;;  %v1723_v19 = vmul.f32 %v1044_v15, %v1044_v15  ;;  %v1649_v48 = vadd.f32 %v1648_v40, %v1044_v15  ;;  %v1754_v32 = vmul.f32 %v1032_v60, %v1032_v60 }
 0x147   : > { %v1724_v52 = vmul.f32 %v1058_v17, %v1058_v17  ;;  %v1817_v26 = vadd.f32 %v1816_v49, %v1753_v45  ;;  %v1681_v53 = vadd.f32 %v1680_v50, %v1032_v60 }
 0x148   : > { %v1786_v51 = vadd.f32 %v1785_v31, %v1723_v19  ;;  %v1650_v35 = vadd.f32 %v1649_v48, %v1058_v17 }
 0x149   : > { %v1818_v62 = vadd.f32 %v1817_v26, %v1754_v32 }
 0x14a   : > { %v1787_v36 = vadd.f32 %v1786_v51, %v1724_v52 }
 0x14c   : > { %v1072_v16 = vpop.f32.mrf.mxu2 }
 0x14d   : > { %v1086_v18 = vpop.f32.mrf.mxu3  ;;  %v1046_v21 = vpop.f32.mrf.mxu0  ;;  %v1725_v54 = vmul.f32 %v1072_v16, %v1072_v16  ;;  %v1651_v61 = vadd.f32 %v1650_v35, %v1072_v16 }
 0x14e   : > { %v1060_v42 = vpop.f32.mrf.mxu1  ;;  %v1755_v43 = vmul.f32 %v1046_v21, %v1046_v21  ;;  %v1682_v1 = vadd.f32 %v1681_v53, %v1046_v21  ;;  %v1726_v4 = vmul.f32 %v1086_v18, %v1086_v18 }
 0x14f   : > { %v1788_v2 = vadd.f32 %v1787_v36, %v1725_v54  ;;  %v1652_v55 = vadd.f32 %v1651_v61, %v1086_v18  ;;  %v1756_v6 = vmul.f32 %v1060_v42, %v1060_v42 }
 0x150   : > { %v1819_v5 = vadd.f32 %v1818_v62, %v1755_v43  ;;  %v1683_v11 = vadd.f32 %v1682_v1, %v1060_v42  ;;  %v2351_v62 = vmov 0.0  }
 0x151   : > { %v1789_v8 = vadd.f32 %v1788_v2, %v1726_v4  ;;  %1432 = vst.msk [vmem:[%s2905_s8] sm:$0xff] %vm1431_vm1, %v2351_v62 }
 0x152   : > { %v1820_v10 = vadd.f32 %v1819_v5, %v1756_v6  ;;  %1433 = vst.msk [vmem:[%s2905_s8 + $0x8] sm:$0xff] %vm1431_vm1, %v2351_v62 }
 0x154   : > { %v1074_v22 = vpop.f32.mrf.mxu2 }
 0x155   : > { %v1088_v24 = vpop.f32.mrf.mxu3  ;;  %v1100_v28 = vpop.f32.mrf.mxu0  ;;  %v1757_v7 = vmul.f32 %v1074_v22, %v1074_v22  ;;  %v1684_v12 = vadd.f32 %v1683_v11, %v1074_v22 }
 0x156   : > { %v1114_v63 = vpop.f32.mrf.mxu1  ;;  %v1727_v46 = vmul.f32 %v1100_v28, %v1100_v28  ;;  %v1653_v9 = vadd.f32 %v1652_v55, %v1100_v28  ;;  %v1758_v25 = vmul.f32 %v1088_v24, %v1088_v24 }
 0x157   : > { %v1728_v14 = vmul.f32 %v1114_v63, %v1114_v63  ;;  %v1821_v17 = vadd.f32 %v1820_v10, %v1757_v7  ;;  %v1685_v18 = vadd.f32 %v1684_v12, %v1088_v24 }
 0x158   : > { %v1790_v57 = vadd.f32 %v1789_v8, %v1727_v46  ;;  %v1654_v21 = vadd.f32 %v1653_v9, %v1114_v63 }
 0x159   : > { %v1822_v0 = vadd.f32 %v1821_v17, %v1758_v25 }
 0x15a   : > { %v1791_v42 = vadd.f32 %v1790_v57, %v1728_v14 }
 0x15c   : > { %v1128_v27 = vpop.f32.mrf.mxu2 }
 0x15d   : > { %v1142_v41 = vpop.f32.mrf.mxu3  ;;  %v1102_v44 = vpop.f32.mrf.mxu0  ;;  %v1729_v23 = vmul.f32 %v1128_v27, %v1128_v27  ;;  %v1655_v34 = vadd.f32 %v1654_v21, %v1128_v27 }
 0x15e   : > { %v1116_v47 = vpop.f32.mrf.mxu1  ;;  %v1759_v33 = vmul.f32 %v1102_v44, %v1102_v44  ;;  %v1686_v28 = vadd.f32 %v1685_v18, %v1102_v44  ;;  %v1730_v22 = vmul.f32 %v1142_v41, %v1142_v41 }
 0x15f   : > { %v1792_v20 = vadd.f32 %v1791_v42, %v1729_v23  ;;  %v1656_v39 = vadd.f32 %v1655_v34, %v1142_v41  ;;  %v1760_v63 = vmul.f32 %v1116_v47, %v1116_v47 }
 0x160   : > { %v1823_v37 = vadd.f32 %v1822_v0, %v1759_v33  ;;  %v1687_v29 = vadd.f32 %v1686_v28, %v1116_v47 }
 0x161   : > { %v1793_v24 = vadd.f32 %v1792_v20, %v1730_v22 }
 0x162   : > { %v1824_v49 = vadd.f32 %v1823_v37, %v1760_v63 }
 0x164   : > { %v1130_v59 = vpop.f32.mrf.mxu2 }
 0x165   : > { %v1144_v30 = vpop.f32.mrf.mxu3  ;;  %v1156_v58 = vpop.f32.mrf.mxu0  ;;  %v1761_v45 = vmul.f32 %v1130_v59, %v1130_v59  ;;  %v1688_v50 = vadd.f32 %v1687_v29, %v1130_v59 }
 0x166   : > { %v1170_v56 = vpop.f32.mrf.mxu1  ;;  %v1731_v3 = vmul.f32 %v1156_v58, %v1156_v58  ;;  %v1657_v48 = vadd.f32 %v1656_v39, %v1156_v58  ;;  %v1762_v47 = vmul.f32 %v1144_v30, %v1144_v30 }
 0x167   : > { %v1732_v44 = vmul.f32 %v1170_v56, %v1170_v56  ;;  %v1825_v51 = vadd.f32 %v1824_v49, %v1761_v45  ;;  %v1689_v41 = vadd.f32 %v1688_v50, %v1144_v30 }
 0x168   : > { %v1794_v27 = vadd.f32 %v1793_v24, %v1731_v3  ;;  %v1658_v52 = vadd.f32 %v1657_v48, %v1170_v56 }
 0x169   : > { %v1826_v36 = vadd.f32 %v1825_v51, %v1762_v47 }
 0x16a   : > { %v1795_v53 = vadd.f32 %v1794_v27, %v1732_v44 }
 0x16c   : > { %v1184_v13 = vpop.f32.mrf.mxu2 }
 0x16d   : > { %v1198_v60 = vpop.f32.mrf.mxu3  ;;  %v1158_v15 = vpop.f32.mrf.mxu0  ;;  %v1733_v26 = vmul.f32 %v1184_v13, %v1184_v13  ;;  %v1659_v32 = vadd.f32 %v1658_v52, %v1184_v13 }
 0x16e   : > { %v1172_v16 = vpop.f32.mrf.mxu1  ;;  %v1763_v35 = vmul.f32 %v1158_v15, %v1158_v15  ;;  %v1690_v61 = vadd.f32 %v1689_v41, %v1158_v15  ;;  %v1734_v56 = vmul.f32 %v1198_v60, %v1198_v60 }
 0x16f   : > { %v1796_v1 = vadd.f32 %v1795_v53, %v1733_v26  ;;  %v1660_v4 = vadd.f32 %v1659_v32, %v1198_v60  ;;  %v1764_v30 = vmul.f32 %v1172_v16, %v1172_v16 }
 0x170   : > { %v1827_v2 = vadd.f32 %v1826_v36, %v1763_v35  ;;  %v1691_v55 = vadd.f32 %v1690_v61, %v1172_v16 }
 0x171   : > { %v1797_v11 = vadd.f32 %v1796_v1, %v1734_v56 }
 0x172   : > { %v1828_v7 = vadd.f32 %v1827_v2, %v1764_v30 }
 0x174   : > { %v1186_v38 = vpop.f32.mrf.mxu2 }
 0x175   : > { %v1200_v40 = vpop.f32.mrf.mxu3  ;;  %v1212_v19 = vpop.f32.mrf.mxu0  ;;  %v1765_v46 = vmul.f32 %v1186_v38, %v1186_v38  ;;  %v1692_v8 = vadd.f32 %v1691_v55, %v1186_v38 }
 0x176   : > { %v1226_v31 = vpop.f32.mrf.mxu1  ;;  %v1735_v5 = vmul.f32 %v1212_v19, %v1212_v19  ;;  %v1661_v6 = vadd.f32 %v1660_v4, %v1212_v19  ;;  %v1766_v18 = vmul.f32 %v1200_v40, %v1200_v40 }
 0x177   : > { %v1736_v12 = vmul.f32 %v1226_v31, %v1226_v31  ;;  %v1829_v14 = vadd.f32 %v1828_v7, %v1765_v46  ;;  %v1693_v23 = vadd.f32 %v1692_v8, %v1200_v40 }
 0x178   : > { %v1798_v10 = vadd.f32 %v1797_v11, %v1735_v5  ;;  %v1662_v17 = vadd.f32 %v1661_v6, %v1226_v31 }
 0x179   : > { %v1830_v16 = vadd.f32 %v1829_v14, %v1766_v18 }
 0x17a   : > { %v1799_v25 = vadd.f32 %v1798_v10, %v1736_v12 }
 0x17c   : > { %v1240_v54 = vpop.f32.mrf.mxu2 }
 0x17d   : > { %v1254_v43 = vpop.f32.mrf.mxu3  ;;  %v1214_v59 = vpop.f32.mrf.mxu0  ;;  %v1737_v21 = vmul.f32 %v1240_v54, %v1240_v54  ;;  %v1663_v33 = vadd.f32 %v1662_v17, %v1240_v54 }
 0x17e   : > { %v1228_v58 = vpop.f32.mrf.mxu1  ;;  %v1767_v60 = vmul.f32 %v1214_v59, %v1214_v59  ;;  %v1694_v42 = vadd.f32 %v1693_v23, %v1214_v59  ;;  %v1738_v0 = vmul.f32 %v1254_v43, %v1254_v43 }
 0x17f   : > { %v1800_v34 = vadd.f32 %v1799_v25, %v1737_v21  ;;  %v1664_v22 = vadd.f32 %v1663_v33, %v1254_v43  ;;  %v1768_v19 = vmul.f32 %v1228_v58, %v1228_v58  ;;  %v1434_v25 = vld [vmem:[%s2905_s8] sm:$0xff] }
 0x180   : > { %v1831_v28 = vadd.f32 %v1830_v16, %v1767_v60  ;;  %v1695_v3 = vadd.f32 %v1694_v42, %v1228_v58 }
 0x181   : > { %v1801_v45 = vadd.f32 %v1800_v34, %v1738_v0 }
 0x182   : > { %v1832_v40 = vadd.f32 %v1831_v28, %v1768_v19 }
 0x184   : > { %v1242_v9 = vpop.f32.mrf.mxu2 }
 0x185   : > { %v1256_v13 = vpop.f32.mrf.mxu3  ;;  %v1268_v57 = vpop.f32.mrf.mxu0  ;;  %v1769_v29 = vmul.f32 %v1242_v9, %v1242_v9  ;;  %v1696_v24 = vadd.f32 %v1695_v3, %v1242_v9 }
 0x186   : > { %v1282_v15 = vpop.f32.mrf.mxu1  ;;  %v1739_v37 = vmul.f32 %v1268_v57, %v1268_v57  ;;  %v1665_v31 = vadd.f32 %v1664_v22, %v1268_v57  ;;  %v1770_v52 = vmul.f32 %v1256_v13, %v1256_v13 }
 0x187   : > { %v1740_v49 = vmul.f32 %v1282_v15, %v1282_v15  ;;  %v1833_v50 = vadd.f32 %v1832_v40, %v1769_v29  ;;  %v1697_v51 = vadd.f32 %v1696_v24, %v1256_v13 }
 0x188   : > { %v1802_v48 = vadd.f32 %v1801_v45, %v1739_v37  ;;  %v1666_v27 = vadd.f32 %v1665_v31, %v1282_v15 }
 0x189   : > { %v1834_v32 = vadd.f32 %v1833_v50, %v1770_v52  ;;  %v1435_v50 = vld [vmem:[%s2905_s8 + $0x8] sm:$0xff] }
 0x18a   : > { %v1803_v47 = vadd.f32 %v1802_v48, %v1740_v49 }
 0x18c   : > { %v1296_v20 = vpop.f32.mrf.mxu2 }
 0x18d   : > { %v1310_v38 = vpop.f32.mrf.mxu3  ;;  %v1270_v39 = vpop.f32.mrf.mxu0  ;;  %v1741_v44 = vmul.f32 %v1296_v20, %v1296_v20  ;;  %v1667_v35 = vadd.f32 %v1666_v27, %v1296_v20 }
 0x18e   : > { %v1284_v63 = vpop.f32.mrf.mxu1  ;;  %v1771_v26 = vmul.f32 %v1270_v39, %v1270_v39  ;;  %v1698_v43 = vadd.f32 %v1697_v51, %v1270_v39  ;;  %v1742_v61 = vmul.f32 %v1310_v38, %v1310_v38 }
 0x18f   : > { %v1804_v36 = vadd.f32 %v1803_v47, %v1741_v44  ;;  %v1668_v62 = vadd.f32 %v1667_v35, %v1310_v38  ;;  %v1772_v2 = vmul.f32 %v1284_v63, %v1284_v63 }
 0x190   : > { %v1835_v58 = vadd.f32 %v1834_v32, %v1771_v26  ;;  %v1699_v56 = vadd.f32 %v1698_v43, %v1284_v63 }
 0x191   : > { %v1805_v5 = vadd.f32 %v1804_v36, %v1742_v61 }
 0x192   : > { %v1836_v30 = vadd.f32 %v1835_v58, %v1772_v2 }
 0x194   : > { %v1298_v41 = vpop.f32.mrf.mxu2 }
 0x195   : > { %v1312_v54 = vpop.f32.mrf.mxu3  ;;  %v1324_v53 = vpop.f32.mrf.mxu0  ;;  %v1773_v4 = vmul.f32 %v1298_v41, %v1298_v41  ;;  %v1700_v46 = vadd.f32 %v1699_v56, %v1298_v41 }
 0x196   : > { %v1338_v59 = vpop.f32.mrf.mxu1  ;;  %v1743_v1 = vmul.f32 %v1324_v53, %v1324_v53  ;;  %v1669_v55 = vadd.f32 %v1668_v62, %v1324_v53  ;;  %v1774_v15 = vmul.f32 %v1312_v54, %v1312_v54 }
 0x197   : > { %v1744_v7 = vmul.f32 %v1338_v59, %v1338_v59  ;;  %v1837_v10 = vadd.f32 %v1836_v30, %v1773_v4  ;;  %v1701_v14 = vadd.f32 %v1700_v46, %v1312_v54 }
 0x198   : > { %v1806_v6 = vadd.f32 %v1805_v5, %v1743_v1  ;;  %v1670_v13 = vadd.f32 %v1669_v55, %v1338_v59 }
 0x199   : > { %v1838_v18 = vadd.f32 %v1837_v10, %v1774_v15 }
 0x19a   : > { %v1807_v21 = vadd.f32 %v1806_v6, %v1744_v7 }
 0x19c   : > { %v1352_v11 = vpop.f32.mrf.mxu2 }
 0x19d   : > { %v1366_v8 = vpop.f32.mrf.mxu3  ;;  %v1326_v9 = vpop.f32.mrf.mxu0  ;;  %v1745_v57 = vmul.f32 %v1352_v11, %v1352_v11  ;;  %v1671_v23 = vadd.f32 %v1670_v13, %v1352_v11 }
 0x19e   : > { %v1340_v12 = vpop.f32.mrf.mxu1  ;;  %v1775_v17 = vmul.f32 %v1326_v9, %v1326_v9  ;;  %v1702_v60 = vadd.f32 %v1701_v14, %v1326_v9  ;;  %v1746_v16 = vmul.f32 %v1366_v8, %v1366_v8 }
 0x19f   : > { %v1808_v33 = vadd.f32 %v1807_v21, %v1745_v57  ;;  %v1672_v28 = vadd.f32 %v1671_v23, %v1366_v8  ;;  %v1776_v39 = vmul.f32 %v1340_v12, %v1340_v12 }
 0x1a0   : > { %v1839_v42 = vadd.f32 %v1838_v18, %v1775_v17  ;;  %v1703_v38 = vadd.f32 %v1702_v60, %v1340_v12 }
 0x1a1   : > { %v1809_v63 = vadd.f32 %v1808_v33, %v1746_v16 }
 0x1a2   : > { %v1840_v31 = vadd.f32 %v1839_v42, %v1776_v39 }
 0x1a4   : > { %v1354_v34 = vpop.f32.mrf.mxu2  ;;  %v1468_v0 = vpop.xlane.xlu0 %1467 }
 0x1a5   : > { %v1368_v20 = vpop.f32.mrf.mxu3  ;;  %v1502_v22 = vadd.f32 %v1468_v0, %v1434_v25  ;;  %v1380_v37 = vpop.f32.mrf.mxu0  ;;  %v1777_v3 = vmul.f32 %v1354_v34, %v1354_v34  ;;  %v1704_v40 = vadd.f32 %v1703_v38, %v1354_v34 }
 0x1a6   : > { %v1394_v19 = vpop.f32.mrf.mxu1  ;;  %v1747_v29 = vmul.f32 %v1380_v37, %v1380_v37  ;;  %v1673_v45 = vadd.f32 %v1672_v28, %v1380_v37  ;;  %v1605_v27 = vpop.xlane.xlu1 %1604  ;;  %v1778_v52 = vmul.f32 %v1368_v20, %v1368_v20 }
 0x1a7   : > { %1505 = vst.msk [vmem:[%s2905_s8] sm:$0xff] %vm1504_vm2, %v1502_v22  ;;  %v1748_v24 = vmul.f32 %v1394_v19, %v1394_v19  ;;  %v1841_v49 = vadd.f32 %v1840_v31, %v1777_v3  ;;  %v1705_v51 = vadd.f32 %v1704_v40, %v1368_v20 }
 0x1a8   : > { %v1810_v48 = vadd.f32 %v1809_v63, %v1747_v29  ;;  %v1674_v44 = vadd.f32 %v1673_v45, %v1394_v19 }
 0x1a9   : > { %v1842_v59 = vadd.f32 %v1841_v49, %v1778_v52 }
 0x1aa   : > { %v1811_v43 = vadd.f32 %v1810_v48, %v1748_v24 }
 0x1ac   : > { %v1408_v26 = vpop.f32.mrf.mxu2  ;;  %v1501_v41 = vpop.xlane.xlu0 %1500 }
 0x1ad   : > { %v1675_v47 = vadd.f32 %v1674_v44, %v1408_v26  ;;  %v1749_v35 = vmul.f32 %v1408_v26, %v1408_v26  ;;  %v1422_v54 = vpop.f32.mrf.mxu3  ;;  %v1503_v53 = vadd.f32 %v1501_v41, %v1435_v50  ;;  %v1382_v32 = vpop.f32.mrf.mxu0 }
 0x1ae   : > { %v1507_v36 = vld [vmem:[%s2905_s8] sm:$0xff]  ;;  %v1750_v61 = vmul.f32 %v1422_v54, %v1422_v54  ;;  %v1779_v58 = vmul.f32 %v1382_v32, %v1382_v32  ;;  %v1706_v1 = vadd.f32 %v1705_v51, %v1382_v32  ;;  %v1396_v4 = vpop.f32.mrf.mxu1  ;;  %v1638_v10 = vpop.xlane.xlu1 %1637 }
 0x1af   : > { %v1639_v62 = vadd.f32 %v1605_v27, %v1507_v36  ;;  %1506 = vst.msk [vmem:[%s2905_s8 + $0x8] sm:$0xff] %vm1504_vm2, %v1503_v53  ;;  %v1676_v56 = vadd.f32 %v1675_v47, %v1422_v54  ;;  %v1812_v2 = vadd.f32 %v1811_v43, %v1749_v35  ;;  %v1780_v30 = vmul.f32 %v1396_v4, %v1396_v4 }
 0x1b0   : > { %v1843_v5 = vadd.f32 %v1842_v59, %v1779_v58  ;;  %v1707_v46 = vadd.f32 %v1706_v1, %v1396_v4 }
 0x1b1   : > { %1642 = vst.msk [vmem:[%s2905_s8] sm:$0xff] %vm1641_vm3, %v1639_v62  ;;  %1677 = vadd.xlane.f32.xlu2 %v1676_v56  ;;  %v1813_v55 = vadd.f32 %v1812_v2, %v1750_v61 }
 0x1b2   : > { %v1844_v8 = vadd.f32 %v1843_v5, %v1780_v30 }
 0x1b3   : > { %1814 = vadd.xlane.f32.xlu0 %v1813_v55 }
 0x1b4   : > { %v1410_v11 = vpop.f32.mrf.mxu2 }
 0x1b5   : > { %v1708_v6 = vadd.f32 %v1707_v46, %v1410_v11  ;;  %v1781_v7 = vmul.f32 %v1410_v11, %v1410_v11  ;;  %v1424_v9 = vpop.f32.mrf.mxu3 }
 0x1b6   : > { %v1508_v12 = vld [vmem:[%s2905_s8 + $0x8] sm:$0xff]  ;;  %v1782_v15 = vmul.f32 %v1424_v9, %v1424_v9 }
 0x1b7   : > { %v1640_v13 = vadd.f32 %v1638_v10, %v1508_v12  ;;  %v1845_v57 = vadd.f32 %v1844_v8, %v1781_v7  ;;  %v1709_v14 = vadd.f32 %v1708_v6, %v1424_v9 }
 0x1b8   : > { %v1644_v21 = vld [vmem:[%s2905_s8] sm:$0xff] }
 0x1b9   : > { %1643 = vst.msk [vmem:[%s2905_s8 + $0x8] sm:$0xff] %vm1641_vm3, %v1640_v13  ;;  %1710 = vadd.xlane.f32.xlu2 %v1709_v14  ;;  %v1846_v17 = vadd.f32 %v1845_v57, %v1782_v15 }
 0x1bb   : > { %1847 = vadd.xlane.f32.xlu1 %v1846_v17 }
 0x1c0   : > { %v1645_v60 = vld [vmem:[%s2905_s8 + $0x8] sm:$0xff] }
 0x224   : > { %v1678_v23 = vpop.xlane.xlu2 %1677 }
 0x225   : > { %v1712_v18 = vadd.f32 %v1678_v23, %v1644_v21 }
 0x226   : > { %v1815_v16 = vpop.xlane.xlu0 %1814 }
 0x227   : > { %1715 = vst.msk [vmem:[%s2905_s8] sm:$0xff] %vm1714_vm4, %v1712_v18 }
 0x22c   : > { %v1711_v25 = vpop.xlane.xlu2 %1710 }
 0x22d   : > { %v1713_v33 = vadd.f32 %v1711_v25, %v1645_v60 }
 0x22e   : > { %v1717_v42 = vld [vmem:[%s2905_s8] sm:$0xff]  ;;  %v1848_v0 = vpop.xlane.xlu1 %1847 }
 0x22f   : > { %v1849_v34 = vadd.f32 %v1815_v16, %v1717_v42  ;;  %1716 = vst.msk [vmem:[%s2905_s8 + $0x8] sm:$0xff] %vm1714_vm4, %v1713_v33 }
 0x231   : > { %1852 = vst.msk [vmem:[%s2905_s8] sm:$0xff] %vm1851_vm5, %v1849_v34 }
 0x236   : > { %v1718_v28 = vld [vmem:[%s2905_s8 + $0x8] sm:$0xff] }
 0x237   : > { %v1850_v20 = vadd.f32 %v1848_v0, %v1718_v28 }
 0x239   : > { %1853 = vst.msk [vmem:[%s2905_s8 + $0x8] sm:$0xff] %vm1851_vm5, %v1850_v20 }
 0x23a PF: > { %s21_s20 = sadd.s32 1, %s2343_s20   ;;  %s2960_s15 = smov %s2327_s16 }
 0x23b   : > { %p18_p2 = scmp.ge.s32.totalorder %s21_s20, 4   ;;  %s2961_s16 = smov %s2331_s17 }
 0x23c   : > { %s2962_s17 = smov %s2452_s26  ;;  %s2963_s18 = smov %s2339_s19 }
 0x23d   : > { %s2964_s19 = smov %s2966_s11  ;;  %20 = sbr.rel (!%p18_p2) target bundleno = 9 (0x9), region = 101 }
 0x242   :  { %1875 = vsyncpa [#allocation3], 1 }
 0x243   :  { %1877 = vsyncpa [#allocation3 + $0x1], 1 }
 0x244   :  { %1878 = vsyncpa [#allocation5], 1 }
 0x245   :  { %1880 = vsyncpa [#allocation5 + $0x1], 1 }
 0x246   :  { %1881 = vsyncpa [#allocation8], 1 }

</bundles_post_ra>
